<compile_context>
chip_gen: v5e
topology: v5e:2x2
jax: 0.10.0
libtpu: 0.0.40
codegen_flags: <defaults>
</compile_context>

<pallas_src>
import functools

import jax
import jax.numpy as jnp
from jax.experimental import pallas as pl
from jax.experimental.pallas import tpu as pltpu


def _round_up(x, m):
    return ((x + m - 1) // m) * m


def _embed_kernel(idx_ref, w_ref, out_ref, *, precision):
    # idx_ref : (TR, J)   int32  pre-offset row ids into W (J = P*K hits/row)
    # w_ref   : (CW, Dp)  fused table (stacked / block-diagonal / row-packed)
    # out_ref : (TR, Dp)  lane-dense output block
    TR, J = idx_ref.shape
    CW = w_ref.shape[0]

    idx = idx_ref[...]                                        # (TR, J)
    col = jax.lax.broadcasted_iota(jnp.int32, (TR, CW), 1)    # (TR, CW)

    # Fused one-hot: the J hits per row live in disjoint CW sub-blocks.
    hit = col == idx[:, 0:1]
    for j in range(1, J):                                     # J is small & static
        hit = hit | (col == idx[:, j:j + 1])
    onehot = hit.astype(w_ref.dtype)                          # exact 0/1

    # Single deep MXU contraction replaces K (x P) tiny gathers + VPU adds.
    acc = jnp.dot(onehot, w_ref[...],
                  preferred_element_type=jnp.float32,
                  precision=precision)
    out_ref[...] = acc.astype(out_ref.dtype)


def build_embed_weights(tables, embedding_behaviour="sum"):
    """Fold the K embedding tables into one matmul weight.  Do this ONCE at init."""
    K = len(tables)
    V = tables[0].shape[0]
    assert all(t.shape[0] == V for t in tables)

    if embedding_behaviour == "sum":
        d_out = tables[0].shape[1]
        assert all(t.shape[1] == d_out for t in tables), (
            "'sum' embedding behaviour requires equal embedding sizes")
        w_base = jnp.concatenate(tables, axis=0)                     # (K*V, d_out)
    else:  # 'concat' -> block-diagonal placement, one pad per table + one concat
        sizes = [t.shape[1] for t in tables]
        d_out = sum(sizes)
        blocks, off = [], 0
        for t in tables:
            blocks.append(jnp.pad(t, ((0, 0), (off, d_out - off - t.shape[1]))))
            off += t.shape[1]
        w_base = jnp.concatenate(blocks, axis=0)                     # (K*V, d_out)

    if d_out % 128 == 0:                       # already lane-dense
        P, Dp, w = 1, d_out, w_base
    elif 128 % d_out == 0:                     # pack P logical rows per 128-lane row
        P = 128 // d_out
        Dp = 128
        w = jnp.concatenate(
            [jnp.pad(w_base, ((0, 0), (p * d_out, Dp - (p + 1) * d_out)))
             for p in range(P)], axis=0)                             # (P*K*V, 128)
    else:                                      # fallback: pad columns, slice later
        P = 1
        Dp = _round_up(d_out, 128)
        w = jnp.pad(w_base, ((0, 0), (0, Dp - d_out)))

    meta = dict(K=K, V=V, d_out=d_out, P=P, Dp=Dp)
    return w, meta


def _choose_row_block(n_rows, requested, align):
    rows_al = _round_up(max(n_rows, 1), align)
    rb = min(_round_up(max(requested, align), align), rows_al)
    # v7x has 2 TensorCores: prefer >= 2 grid steps when there is enough work.
    if _round_up(n_rows, rb) // rb < 2 and rows_al >= 2 * align:
        rb = _round_up(rows_al // 2, align)
    return rb


def embed_apply(indices, w, meta, *, row_block=2048, out_dtype=None):
    """indices [B, K, T] int -> embeddings [B, T, d_out] (Pallas kernel call)."""
    B, K, T = indices.shape
    assert K == meta["K"]
    V, d_out, P, Dp = meta["V"], meta["d_out"], meta["P"], meta["Dp"]
    KV = K * V
    CW = w.shape[0]                        # = P * K * V
    out_dtype = w.dtype if out_dtype is None else out_dtype

    R = B * T
    align = 8 * P                          # packed output rows stay 8-sublane aligned
    rb = _choose_row_block(R, row_block, align)
    Rp = _round_up(R, rb)
    grid = (Rp // rb,)
    rbq = rb // P                          # output rows per grid step
    Rq = Rp // P
    J = P * K

    # Row-major [B*T, K] indices, clipped (matches jnp.take / reference) and
    # pre-offset so each value is directly a row id into the fused table.
    idx = indices.transpose(0, 2, 1).reshape(R, K).astype(jnp.int32)
    idx = jnp.clip(idx, 0, V - 1)
    idx = idx + (jnp.arange(K, dtype=jnp.int32) * V)[None, :]
    if Rp != R:
        idx = jnp.pad(idx, ((0, Rp - R), (0, 0)))
    if P > 1:
        idx = idx + ((jnp.arange(Rp, dtype=jnp.int32) % P) * KV)[:, None]
    idx = idx.reshape(Rq, J)

    # VMEM budget: double-buffered idx/out/table blocks + one-hot/acc temps,
    # capped at 48 MiB to leave headroom inside v7x's 64 MiB physical VMEM.
    w_item = jnp.dtype(w.dtype).itemsize
    o_item = jnp.dtype(out_dtype).itemsize
    vmem_bytes = (2 * rbq * J * 4
                  + 2 * CW * Dp * w_item
                  + 2 * rbq * Dp * o_item
                  + rbq * CW * 4
                  + rbq * Dp * 4
                  + (4 << 20))
    vmem_limit = int(min(max(vmem_bytes, 8 << 20), 48 << 20))

    # Exact row-select for f32 tables; bf16 tables are exact by construction.
    precision = jax.lax.Precision.HIGHEST if w.dtype == jnp.float32 else None
    kernel = functools.partial(_embed_kernel, precision=precision)

    out = pl.pallas_call(
        kernel,
        out_shape=jax.ShapeDtypeStruct((Rq, Dp), out_dtype),
        grid_spec=pltpu.PrefetchScalarGridSpec(
            num_scalar_prefetch=0,
            grid=grid,
            in_specs=[
                pl.BlockSpec((rbq, J), lambda r: (r, 0)),
                # Grid-invariant table block: fetched once, reused every step.
                pl.BlockSpec((CW, Dp), lambda r: (0, 0)),
            ],
            out_specs=pl.BlockSpec((rbq, Dp), lambda r: (r, 0)),
        ),
        compiler_params=pltpu.CompilerParams(
            dimension_semantics=("parallel",),
            vmem_limit_bytes=vmem_limit),
    )(idx, w)

    # Free row-major "unpacking": (Rq, 128) is bit-identical to (Rp, d_out).
    if P > 1:
        out = out.reshape(Rp, d_out)
    elif Dp != d_out:
        out = out[:, :d_out]
    if Rp != R:
        out = out[:R]
    return out.reshape(B, T, d_out)


def embed_forward(indices, tables, embedding_behaviour="sum", *,
                  row_block=2048, out_dtype=None):
    """Pallas equivalent of Embed.forward.

    Builds the fused weight per call for convenience; in real use call
    build_embed_weights() once at module init and reuse (w, meta).
    """
    w, meta = build_embed_weights(tables, embedding_behaviour)
    return embed_apply(indices, w, meta, row_block=row_block, out_dtype=out_dtype)


def _reference(indices, tables, embedding_behaviour="sum"):
    B, K, T = indices.shape
    embs = [jnp.take(tables[k], indices[:, k, :], axis=0) for k in range(K)]
    if embedding_behaviour == "sum":
        out = embs[0]
        for e in embs[1:]:
            out = out + e
        return out
    return jnp.concatenate(embs, axis=-1)


if __name__ == "__main__":
    # Small, deterministic setup consistent with Embed(__init__):
    #   n_codebooks=4, card=29 -> vocab V = card+3 = 32, embedding_sizes = [32]*4
    B, K, T = 2, 4, 8
    card = 29
    V = card + 3
    D = 32
    embedding_sizes = [D] * K

    key = jax.random.PRNGKey(0)
    k_idx, *k_tbls = jax.random.split(key, 1 + K)
    indices = jax.random.randint(k_idx, (B, K, T), 0, V, dtype=jnp.int32)
    tables = [
        (jax.random.normal(k_tbls[k], (V, embedding_sizes[k]), dtype=jnp.float32) * 0.02)
        for k in range(K)
    ]

    # 'sum' behaviour (row-packed lane-dense output: 4 rows of D=32 per 128-lane row)
    out_sum = embed_forward(indices, tables, "sum")
    out_sum = jax.block_until_ready(out_sum)
    ref_sum = _reference(indices, tables, "sum")
    assert out_sum.shape == (B, T, D)
    assert jnp.allclose(out_sum, ref_sum, atol=1e-5, rtol=1e-5)

    # 'concat' behaviour (single fused kernel via block-diagonal W; K*D = 128, unpadded)
    out_cat = embed_forward(indices, tables, "concat")
    out_cat = jax.block_until_ready(out_cat)
    ref_cat = _reference(indices, tables, "concat")
    assert out_cat.shape == (B, T, sum(embedding_sizes))
    assert jnp.allclose(out_cat, ref_cat, atol=1e-5, rtol=1e-5)

    print("KERNEL_OK")
</pallas_src>

<mosaic_0001>
module attributes {stable_mosaic.version = 11 : i64} {
  func.func @_embed_kernel(%arg0: i32, %arg1: memref<8x16xi32, #tpu.memory_space<vmem>>, %arg2: memref<512x128xf32, #tpu.memory_space<vmem>>, %arg3: memref<8x128xf32, #tpu.memory_space<vmem>>) attributes {dimension_semantics = [#tpu.dimension_semantics<parallel>], iteration_bounds = array<i64: 1>, scalar_prefetch = 0 : i64, scratch_operands = 0 : i64, tpu.core_type = #tpu.core_type<tc>, window_params = [{transform_indices = @transform_0, window_bounds = array<i64: 8, 16>}, {pipeline_mode = #tpu.pipeline_mode<synchronous>, transform_indices = @transform_1, window_bounds = array<i64: 512, 128>}, {transform_indices = @transform_2, window_bounds = array<i64: 8, 128>}]} {
    %c0 = arith.constant 0 : index
    %c0_0 = arith.constant 0 : index
    %0 = vector.load %arg1[%c0, %c0_0] : memref<8x16xi32, #tpu.memory_space<vmem>>, vector<8x16xi32>
    %1 = tpu.iota {dimensions = array<i32: 1>} : vector<8x512xi32>
    %2 = vector.extract_strided_slice %0 {offsets = [0, 0], sizes = [8, 1], strides = [1, 1]} : vector<8x16xi32> to vector<8x1xi32>
    %3 = vector.broadcast %2 : vector<8x1xi32> to vector<8x512xi32>
    %4 = arith.cmpi eq, %1, %3 : vector<8x512xi32>
    %5 = vector.extract_strided_slice %0 {offsets = [0, 1], sizes = [8, 1], strides = [1, 1]} : vector<8x16xi32> to vector<8x1xi32>
    %6 = vector.broadcast %5 : vector<8x1xi32> to vector<8x512xi32>
    %7 = arith.cmpi eq, %1, %6 : vector<8x512xi32>
    %8 = arith.ori %4, %7 : vector<8x512xi1>
    %9 = vector.extract_strided_slice %0 {offsets = [0, 2], sizes = [8, 1], strides = [1, 1]} : vector<8x16xi32> to vector<8x1xi32>
    %10 = vector.broadcast %9 : vector<8x1xi32> to vector<8x512xi32>
    %11 = arith.cmpi eq, %1, %10 : vector<8x512xi32>
    %12 = arith.ori %8, %11 : vector<8x512xi1>
    %13 = vector.extract_strided_slice %0 {offsets = [0, 3], sizes = [8, 1], strides = [1, 1]} : vector<8x16xi32> to vector<8x1xi32>
    %14 = vector.broadcast %13 : vector<8x1xi32> to vector<8x512xi32>
    %15 = arith.cmpi eq, %1, %14 : vector<8x512xi32>
    %16 = arith.ori %12, %15 : vector<8x512xi1>
    %17 = vector.extract_strided_slice %0 {offsets = [0, 4], sizes = [8, 1], strides = [1, 1]} : vector<8x16xi32> to vector<8x1xi32>
    %18 = vector.broadcast %17 : vector<8x1xi32> to vector<8x512xi32>
    %19 = arith.cmpi eq, %1, %18 : vector<8x512xi32>
    %20 = arith.ori %16, %19 : vector<8x512xi1>
    %21 = vector.extract_strided_slice %0 {offsets = [0, 5], sizes = [8, 1], strides = [1, 1]} : vector<8x16xi32> to vector<8x1xi32>
    %22 = vector.broadcast %21 : vector<8x1xi32> to vector<8x512xi32>
    %23 = arith.cmpi eq, %1, %22 : vector<8x512xi32>
    %24 = arith.ori %20, %23 : vector<8x512xi1>
    %25 = vector.extract_strided_slice %0 {offsets = [0, 6], sizes = [8, 1], strides = [1, 1]} : vector<8x16xi32> to vector<8x1xi32>
    %26 = vector.broadcast %25 : vector<8x1xi32> to vector<8x512xi32>
    %27 = arith.cmpi eq, %1, %26 : vector<8x512xi32>
    %28 = arith.ori %24, %27 : vector<8x512xi1>
    %29 = vector.extract_strided_slice %0 {offsets = [0, 7], sizes = [8, 1], strides = [1, 1]} : vector<8x16xi32> to vector<8x1xi32>
    %30 = vector.broadcast %29 : vector<8x1xi32> to vector<8x512xi32>
    %31 = arith.cmpi eq, %1, %30 : vector<8x512xi32>
    %32 = arith.ori %28, %31 : vector<8x512xi1>
    %33 = vector.extract_strided_slice %0 {offsets = [0, 8], sizes = [8, 1], strides = [1, 1]} : vector<8x16xi32> to vector<8x1xi32>
    %34 = vector.broadcast %33 : vector<8x1xi32> to vector<8x512xi32>
    %35 = arith.cmpi eq, %1, %34 : vector<8x512xi32>
    %36 = arith.ori %32, %35 : vector<8x512xi1>
    %37 = vector.extract_strided_slice %0 {offsets = [0, 9], sizes = [8, 1], strides = [1, 1]} : vector<8x16xi32> to vector<8x1xi32>
    %38 = vector.broadcast %37 : vector<8x1xi32> to vector<8x512xi32>
    %39 = arith.cmpi eq, %1, %38 : vector<8x512xi32>
    %40 = arith.ori %36, %39 : vector<8x512xi1>
    %41 = vector.extract_strided_slice %0 {offsets = [0, 10], sizes = [8, 1], strides = [1, 1]} : vector<8x16xi32> to vector<8x1xi32>
    %42 = vector.broadcast %41 : vector<8x1xi32> to vector<8x512xi32>
    %43 = arith.cmpi eq, %1, %42 : vector<8x512xi32>
    %44 = arith.ori %40, %43 : vector<8x512xi1>
    %45 = vector.extract_strided_slice %0 {offsets = [0, 11], sizes = [8, 1], strides = [1, 1]} : vector<8x16xi32> to vector<8x1xi32>
    %46 = vector.broadcast %45 : vector<8x1xi32> to vector<8x512xi32>
    %47 = arith.cmpi eq, %1, %46 : vector<8x512xi32>
    %48 = arith.ori %44, %47 : vector<8x512xi1>
    %49 = vector.extract_strided_slice %0 {offsets = [0, 12], sizes = [8, 1], strides = [1, 1]} : vector<8x16xi32> to vector<8x1xi32>
    %50 = vector.broadcast %49 : vector<8x1xi32> to vector<8x512xi32>
    %51 = arith.cmpi eq, %1, %50 : vector<8x512xi32>
    %52 = arith.ori %48, %51 : vector<8x512xi1>
    %53 = vector.extract_strided_slice %0 {offsets = [0, 13], sizes = [8, 1], strides = [1, 1]} : vector<8x16xi32> to vector<8x1xi32>
    %54 = vector.broadcast %53 : vector<8x1xi32> to vector<8x512xi32>
    %55 = arith.cmpi eq, %1, %54 : vector<8x512xi32>
    %56 = arith.ori %52, %55 : vector<8x512xi1>
    %57 = vector.extract_strided_slice %0 {offsets = [0, 14], sizes = [8, 1], strides = [1, 1]} : vector<8x16xi32> to vector<8x1xi32>
    %58 = vector.broadcast %57 : vector<8x1xi32> to vector<8x512xi32>
    %59 = arith.cmpi eq, %1, %58 : vector<8x512xi32>
    %60 = arith.ori %56, %59 : vector<8x512xi1>
    %61 = vector.extract_strided_slice %0 {offsets = [0, 15], sizes = [8, 1], strides = [1, 1]} : vector<8x16xi32> to vector<8x1xi32>
    %62 = vector.broadcast %61 : vector<8x1xi32> to vector<8x512xi32>
    %63 = arith.cmpi eq, %1, %62 : vector<8x512xi32>
    %64 = arith.ori %60, %63 : vector<8x512xi1>
    %65 = arith.extui %64 : vector<8x512xi1> to vector<8x512xi32>
    %66 = arith.sitofp %65 : vector<8x512xi32> to vector<8x512xf32>
    %c0_1 = arith.constant 0 : index
    %c0_2 = arith.constant 0 : index
    %67 = vector.load %arg2[%c0_1, %c0_2] : memref<512x128xf32, #tpu.memory_space<vmem>>, vector<512x128xf32>
    %cst = arith.constant dense<0.000000e+00> : vector<8x128xf32>
    %68 = tpu.matmul %66, %67, %cst {dimension_numbers = #tpu.dot_dimension_numbers<[1], [0], [0], [1], [0, 0, 1, 1], [], []>, precision = #tpu.contract_precision<fp32>} : vector<8x512xf32>, vector<512x128xf32>, vector<8x128xf32> -> vector<8x128xf32>
    %c0_3 = arith.constant 0 : index
    %c0_4 = arith.constant 0 : index
    %69 = vector.load %arg3[%c0_3, %c0_4] : memref<8x128xf32, #tpu.memory_space<vmem>>, vector<8x128xf32>
    tpu.vector_store %arg3[%c0_3, %c0_4], %68 {strides = array<i32>} : memref<8x128xf32, #tpu.memory_space<vmem>>, vector<8x128xf32>,
    return
  }
  func.func @transform_0(%arg0: i32) -> (i32, i32) {
    %c0_i32 = arith.constant 0 : i32
    %c0_i32_0 = arith.constant 0 : i32
    return %arg0, %c0_i32 : i32, i32
  }
  func.func @transform_1(%arg0: i32) -> (i32, i32) {
    %c0_i32 = arith.constant 0 : i32
    %c0_i32_0 = arith.constant 0 : i32
    %c0_i32_1 = arith.constant 0 : i32
    return %c0_i32, %c0_i32_0 : i32, i32
  }
  func.func @transform_2(%arg0: i32) -> (i32, i32) {
    %c0_i32 = arith.constant 0 : i32
    %c0_i32_0 = arith.constant 0 : i32
    return %arg0, %c0_i32 : i32, i32
  }
}

</mosaic_0001>

<bundles_post_ra>
// kernel: tpu_custom_call.1
= control target key start
LH: loop header
LB: loop body
LE: loop exit
PB: predicated region body
PF: predicated region fallthrough
CT: control target
= control target key end

     0   :  { %7 = vsyncpa [#allocation3], 0  ;;  %s3193_s0 = inlined_call_operand.hbm [shape: s32[8,16], index: 0, kind: input, shape index: {}]   ;;  %s3194_s1 = inlined_call_operand.hbm [shape: f32[512,128], index: 1, kind: input, shape index: {}]   ;;  %s3195_s2 = inlined_call_operand.hbm [shape: f32[8,128], index: 2, kind: output, shape index: {}]  }
   0x1   :  { %8 = vsyncpa [#allocation6], 0 }
   0x2   :  { %9 = vsyncpa [#allocation4], 0  ;;  %s15_s11 = sshll.u32 %s3193_s0, 4  ;;  %s1796_s12 = smov [#allocation2]   ;;  %s16_s11 = int_to_ptr.hbm [resolvable:$true] %s15_s11 }
   0x3   :  { %s17_s13 = sshll.u32 %s1796_s12, 4  ;;  %s25_s16 = sshll.u32 %s3194_s1, 4  ;;  %s18_s13 = int_to_ptr.vmem [resolvable:$true] %s17_s13  ;;  %s26_s16 = int_to_ptr.hbm [resolvable:$true] %s25_s16 }
   0x4   :  { %20 = dma.hbm_to_vmem [thread:$0]  %s16_s11, 128, %s18_s13, [#allocation3]  }
   0x5   :  { %s1797_s17 = smov [#allocation5]   ;;  %s1798_s19 = smov 128  }
   0x6   :  { %s27_s18 = sshll.u32 %s1797_s17, 4  ;;  %s1799_s20 = smov 8   ;;  %s28_s18 = int_to_ptr.vmem [resolvable:$true] %s27_s18 }
   0x7   :  { %33 = dma.hbm_to_vmem [thread:$0]  %s26_s16, 8192, %s28_s18, [#allocation6], %s1798_s19, %s1798_s19, %s1799_s20  }
   0x8   :  { %1790 = dma.done.wait [#allocation3], 128  }
   0x9   :  { %1791 = vsyncadd [#allocation3], 4294967168 }
   0xa   :  { %1792 = dma.done.wait [#allocation6], 8192  }
   0xb   :  { %1793 = vsyncadd [#allocation6], 4294959104  ;;  %v1800_v0 = vmov 2   ;;  %v1801_v1 = vmov 0   ;;  %v1802_v2 = vmov 4   ;;  %v1839_v3 = vld [vmem:[#allocation2] sm:$0xff] }
   0xc   :  { %1703 = vset.pattern.permute.xlu1 %v1800_v0  ;;  %1701 = vset.pattern.permute.xlu0 %v1801_v1  ;;  %v1803_v4 = vmov 3   ;;  %v1804_v5 = vmov 1   ;;  %v1805_v6 = vmov 5   ;;  %v243_v7 = vld [vmem:[#allocation5 + $0x78] sm:$0xff]  ;;  %v242_v8 = vld [vmem:[#allocation5 + $0x70] sm:$0xff]  ;;  %v241_v9 = vld [vmem:[#allocation5 + $0x68] sm:$0xff] }
   0xd   :  { %1705 = vset.pattern.permute.xlu2 %v1802_v2  ;;  %67 = vperm.xlu1 %1703, %v1839_v3   ;;  %v1847_v10 = vand.u32 4294901760, %v243_v7  ;;  %v1849_v11 = vand.u32 4294901760, %v242_v8  ;;  %v1851_v12 = vand.u32 4294901760, %v241_v9  ;;  %v240_v13 = vld [vmem:[#allocation5 + $0x60] sm:$0xff]  ;;  %v239_v14 = vld [vmem:[#allocation5 + $0x58] sm:$0xff]  ;;  %v238_v15 = vld [vmem:[#allocation5 + $0x50] sm:$0xff] }
   0xe   :  { %49 = vperm.xlu0 %1701, %v1839_v3   ;;  %89 = vperm.xlu2 %1705, %v1839_v3   ;;  %v1806_v16 = vmov 6   ;;  %v1807_v17 = vmov 8   ;;  %v1853_v18 = vand.u32 4294901760, %v240_v13  ;;  %v1855_v19 = vand.u32 4294901760, %v239_v14  ;;  %v237_v20 = vld [vmem:[#allocation5 + $0x48] sm:$0xff]  ;;  %v236_v59 = vld [vmem:[#allocation5 + $0x40] sm:$0xff] }
   0xf   :  { %v1860_v21 = vsub.f32 %v243_v7, %v1847_v10  ;;  %v1863_v22 = vsub.f32 %v242_v8, %v1849_v11  ;;  %v1866_v23 = vsub.f32 %v241_v9, %v1851_v12  ;;  %v1868_v24 = vand.u32 4294901760, %v238_v15  ;;  %489 = vmatpush.msra.mxu3 %v1847_v10  ;;  %293 = vmatpush.msra.mxu0 %v1847_v10  ;;  %v235_v61 = vld [vmem:[#allocation5 + $0x38] sm:$0xff]  ;;  %v234_v0 = vld [vmem:[#allocation5 + $0x30] sm:$0xff]  ;;  %s1817_s0 = smov [#allocation7]   ;;  %s1664_s23 = sshll.u32 %s3195_s2, 4  ;;  %s1665_s23 = int_to_ptr.hbm [resolvable:$true] %s1664_s23 }
  0x10   :  { %v1808_v25 = vmov 7   ;;  %v1872_v26 = vsub.f32 %v240_v13, %v1853_v18  ;;  %v1874_v27 = vand.u32 4294901760, %v237_v20  ;;  %v1882_v31 = vsub.f32 %v239_v14, %v1855_v19  ;;  %s1662_s1 = sshll.u32 %s1817_s0, 4  ;;  %s1663_s1 = int_to_ptr.vmem [resolvable:$true] %s1662_s1 }
  0x11   :  { %v335_v28 = vand.u32 4294901760, %v1860_v21  ;;  %v341_v29 = vand.u32 4294901760, %v1863_v22  ;;  %436 = vmatpush.msra.mxu2 %v1860_v21  ;;  %v347_v30 = vand.u32 4294901760, %v1866_v23  ;;  %491 = vmatpush.msra.mxu3 %v1849_v11  ;;  %v1895_v35 = vsub.f32 %v238_v15, %v1868_v24 }
  0x12   :  { %v353_v34 = vand.u32 4294901760, %v1872_v26  ;;  %295 = vmatpush.msra.mxu0 %v1849_v11  ;;  %v359_v38 = vand.u32 4294901760, %v1882_v31  ;;  %v1905_v39 = vsub.f32 %v237_v20, %v1874_v27  ;;  %v1809_v40 = vmov 9  }
  0x13   :  { %v336_v32 = vsub.f32 %v1860_v21, %v335_v28  ;;  %v342_v33 = vsub.f32 %v1863_v22, %v341_v29  ;;  %439 = vmatpush.msra.mxu2 %v1863_v22  ;;  %493 = vmatpush.msra.mxu3 %v1851_v12  ;;  %v348_v37 = vsub.f32 %v1866_v23, %v347_v30  ;;  %v1810_v41 = vmov 13  }
  0x14   :  { %297 = vmatpush.msra.mxu0 %v1851_v12  ;;  %v354_v43 = vsub.f32 %v1872_v26, %v353_v34  ;;  %v365_v44 = vand.u32 4294901760, %v1895_v35  ;;  %v1811_v45 = vmov 10   ;;  %v360_v47 = vsub.f32 %v1882_v31, %v359_v38 }
  0x15   :  { %1704 = vset.pattern.permute.xlu1 %v1803_v4  ;;  %v337_v36 = vand.u32 4294901760, %v336_v32  ;;  %442 = vmatpush.msra.mxu2 %v1866_v23  ;;  %v343_v42 = vand.u32 4294901760, %v342_v33  ;;  %v349_v46 = vand.u32 4294901760, %v348_v37  ;;  %v371_v48 = vand.u32 4294901760, %v1905_v39  ;;  %v233_v4 = vld [vmem:[#allocation5 + $0x28] sm:$0xff] }
  0x16   :  { %1702 = vset.pattern.permute.xlu0 %v1804_v5  ;;  %78 = vperm.xlu1 %1704, %v1839_v3   ;;  %v355_v49 = vand.u32 4294901760, %v354_v43  ;;  %v366_v50 = vsub.f32 %v1895_v35, %v365_v44  ;;  %v361_v51 = vand.u32 4294901760, %v360_v47  ;;  %v1812_v54 = vmov 11   ;;  %v230_v47 = vld [vmem:[#allocation5 + $0x10] sm:$0xff] }
  0x17   :  { %56 = vperm.xlu0 %1702, %v1839_v3   ;;  %1706 = vset.pattern.permute.xlu2 %v1805_v6  ;;  %v372_v52 = vsub.f32 %v1905_v39, %v371_v48  ;;  %v1813_v56 = vmov 12   ;;  %v1814_v57 = vmov 15   ;;  %v1815_v58 = vmov 14  }
  0x18   :  { %100 = vperm.xlu2 %1706, %v1839_v3   ;;  %495 = vmatpush.msra.mxu3 %v1853_v18  ;;  %v367_v53 = vand.u32 4294901760, %v366_v50  ;;  %v1941_v60 = vand.u32 4294901760, %v236_v59  ;;  %v1946_v63 = vand.u32 4294901760, %v235_v61  ;;  %v1967_v8 = vand.u32 4294901760, %v233_v4 }
  0x19   :  { %338 = vmatpush.msra.mxu1 %v337_v36  ;;  %445 = vmatpush.msra.mxu2 %v1872_v26  ;;  %v373_v55 = vand.u32 4294901760, %v372_v52  ;;  %v232_v36 = vld [vmem:[#allocation5 + $0x20] sm:$0xff]  ;;  %v2006_v50 = vand.u32 4294901760, %v230_v47 }
  0x1a   :  { %497 = vmatpush.msra.mxu3 %v1855_v19  ;;  %299 = vmatpush.msra.mxu0 %v1853_v18  ;;  %v1944_v62 = vsub.f32 %v236_v59, %v1941_v60  ;;  %v1952_v2 = vsub.f32 %v235_v61, %v1946_v63  ;;  %v1976_v15 = vsub.f32 %v233_v4, %v1967_v8  ;;  %v1989_v37 = vand.u32 4294901760, %v232_v36 }
  0x1b   :  { %344 = vmatpush.msra.mxu1 %v343_v42  ;;  %448 = vmatpush.msra.mxu2 %v1882_v31 }
  0x1c   :  { %499 = vmatpush.msra.mxu3 %v1868_v24  ;;  %301 = vmatpush.msra.mxu0 %v1855_v19  ;;  %v377_v1 = vand.u32 4294901760, %v1944_v62  ;;  %v383_v6 = vand.u32 4294901760, %v1952_v2  ;;  %v395_v20 = vand.u32 4294901760, %v1976_v15 }
  0x1d   :  { %350 = vmatpush.msra.mxu1 %v349_v46  ;;  %451 = vmatpush.msra.mxu2 %v1895_v35  ;;  %v254_v35 = vld [vmem:[#allocation5 + $0xd0] sm:$0xff] }
  0x1e   :  { %1707 = vset.pattern.permute.xlu1 %v1806_v16  ;;  %501 = vmatpush.msra.mxu3 %v1874_v27  ;;  %v378_v5 = vsub.f32 %v1944_v62, %v377_v1  ;;  %v384_v13 = vsub.f32 %v1952_v2, %v383_v6  ;;  %v396_v32 = vsub.f32 %v1976_v15, %v395_v20 }
  0x1f   :  { %1709 = vset.pattern.permute.xlu0 %v1807_v17  ;;  %111 = vperm.xlu1 %1707, %v1839_v3  }
  0x20   :  { %133 = vperm.xlu0 %1709, %v1839_v3   ;;  %1708 = vset.pattern.permute.xlu2 %v1808_v25  ;;  %v379_v9 = vand.u32 4294901760, %v378_v5  ;;  %v385_v16 = vand.u32 4294901760, %v384_v13  ;;  %v397_v33 = vand.u32 4294901760, %v396_v32  ;;  %v43_v32 = vlaneseq }
  0x21   :  { %122 = vperm.xlu2 %1708, %v1839_v3   ;;  %356 = vmatpush.msra.mxu1 %v355_v49 }
  0x22   :  { %454 = vmatpush.msra.mxu2 %v1905_v39  ;;  %303 = vmatpush.msra.mxu0 %v1868_v24 }
  0x23   :  { %362 = vmatpush.msra.mxu1 %v361_v51  ;;  %503 = vmatpush.msra.mxu3 %v1941_v60  ;;  %v229_v51 = vld [vmem:[#allocation5 + $0x8] sm:$0xff] }
  0x24   :  { %305 = vmatpush.msra.mxu0 %v1874_v27  ;;  %457 = vmatpush.msra.mxu2 %v1944_v62 }
  0x25   :  { %368 = vmatpush.msra.mxu1 %v367_v53  ;;  %505 = vmatpush.msra.mxu3 %v1946_v63  ;;  %v2012_v53 = vsub.f32 %v230_v47, %v2006_v50 }
  0x26   :  { %307 = vmatpush.msra.mxu0 %v1941_v60  ;;  %460 = vmatpush.msra.mxu2 %v1952_v2 }
  0x27   :  { %1710 = vset.pattern.permute.xlu1 %v1809_v40  ;;  %374 = vmatpush.msra.mxu1 %v373_v55  ;;  %v1992_v40 = vsub.f32 %v232_v36, %v1989_v37  ;;  %v228_v55 = vld [vmem:[#allocation5] sm:$0xff]  ;;  %v259_v36 = vld [vmem:[#allocation5 + $0xf8] sm:$0xff] }
  0x28   :  { %1714 = vset.pattern.permute.xlu0 %v1810_v41  ;;  %144 = vperm.xlu1 %1710, %v1839_v3   ;;  %v2027_v59 = vand.u32 4294901760, %v228_v55  ;;  %v2057_v21 = vand.u32 4294901760, %v259_v36 }
  0x29   :  { %188 = vperm.xlu0 %1714, %v1839_v3   ;;  %1711 = vset.pattern.permute.xlu2 %v1811_v45  ;;  %v401_v41 = vand.u32 4294901760, %v1992_v40  ;;  %v231_v45 = vld [vmem:[#allocation5 + $0x18] sm:$0xff] }
  0x2a   :  { %155 = vperm.xlu2 %1711, %v1839_v3   ;;  %309 = vmatpush.msra.mxu0 %v1946_v63  ;;  %v2001_v46 = vand.u32 4294901760, %v231_v45  ;;  %v2036_v5 = vsub.f32 %v228_v55, %v2027_v59  ;;  %v2067_v22 = vsub.f32 %v259_v36, %v2057_v21  ;;  %v2145_v36 = vand.u32 4294901760, %v254_v35 }
  0x2b   :  { %380 = vmatpush.msra.mxu1 %v379_v9  ;;  %v402_v42 = vsub.f32 %v1992_v40, %v401_v41 }
  0x2c   :  { %v2004_v49 = vsub.f32 %v231_v45, %v2001_v46  ;;  %v676_v26 = vand.u32 4294901760, %v2067_v22 }
  0x2d   :  { %386 = vmatpush.msra.mxu1 %v385_v16  ;;  %v403_v43 = vand.u32 4294901760, %v402_v42  ;;  %v425_v16 = vand.u32 4294901760, %v2036_v5 }
  0x2e   :  { %v407_v52 = vand.u32 4294901760, %v2004_v49 }
  0x30   :  { %1712 = vset.pattern.permute.xlu1 %v1812_v54  ;;  %v2015_v54 = vand.u32 4294901760, %v229_v51 }
  0x31   :  { %166 = vperm.xlu1 %1712, %v1839_v3   ;;  %1717 = vset.pattern.permute.xlu0 %v1814_v57 }
  0x32   :  { %1713 = vset.pattern.permute.xlu2 %v1813_v56  ;;  %v408_v56 = vsub.f32 %v2004_v49, %v407_v52 }
  0x33   :  { %177 = vperm.xlu2 %1713, %v1839_v3  }
  0x34   :  { %v409_v61 = vand.u32 4294901760, %v408_v56 }
  0x39   :  { %1715 = vset.pattern.permute.xlu1 %v1815_v58  ;;  %v2025_v58 = vsub.f32 %v229_v51, %v2015_v54  ;;  %v256_v51 = vld [vmem:[#allocation5 + $0xe0] sm:$0xff] }
  0x3a   :  { %199 = vperm.xlu1 %1715, %v1839_v3  }
  0x3b   :  { %1716 = vset.pattern.permute.xlu2 %v1814_v57  ;;  %v413_v57 = vand.u32 4294901760, %v2012_v53  ;;  %v419_v4 = vand.u32 4294901760, %v2025_v58 }
  0x3c   :  { %210 = vperm.xlu2 %1716, %v1839_v3   ;;  %v1955_v3 = vand.u32 4294901760, %v234_v0 }
  0x3d   :  { %v420_v13 = vsub.f32 %v2025_v58, %v419_v4 }
  0x3e   :  { %v1964_v7 = vsub.f32 %v234_v0, %v1955_v3  ;;  %507 = vmatpush.msra.mxu3 %v1955_v3  ;;  %311 = vmatpush.msra.mxu0 %v1955_v3  ;;  %v414_v0 = vsub.f32 %v2012_v53, %v413_v57 }
  0x40   :  { %v389_v14 = vand.u32 4294901760, %v1964_v7  ;;  %463 = vmatpush.msra.mxu2 %v1964_v7  ;;  %509 = vmatpush.msra.mxu3 %v1967_v8  ;;  %v415_v9 = vand.u32 4294901760, %v414_v0 }
  0x41   :  { %313 = vmatpush.msra.mxu0 %v1967_v8 }
  0x42   :  { %v390_v17 = vsub.f32 %v1964_v7, %v389_v14  ;;  %466 = vmatpush.msra.mxu2 %v1976_v15  ;;  %511 = vmatpush.msra.mxu3 %v1989_v37 }
  0x43   :  { %315 = vmatpush.msra.mxu0 %v1989_v37 }
  0x44   :  { %v391_v25 = vand.u32 4294901760, %v390_v17  ;;  %469 = vmatpush.msra.mxu2 %v1992_v40  ;;  %513 = vmatpush.msra.mxu3 %v2001_v46  ;;  %v421_v17 = vand.u32 4294901760, %v420_v13 }
  0x45   :  { %317 = vmatpush.msra.mxu0 %v2001_v46 }
  0x46   :  { %392 = vmatpush.msra.mxu1 %v391_v25  ;;  %472 = vmatpush.msra.mxu2 %v2004_v49  ;;  %v426_v25 = vsub.f32 %v2036_v5, %v425_v16 }
  0x47   :  { %515 = vmatpush.msra.mxu3 %v2006_v50  ;;  %319 = vmatpush.msra.mxu0 %v2006_v50 }
  0x48   :  { %398 = vmatpush.msra.mxu1 %v397_v33  ;;  %475 = vmatpush.msra.mxu2 %v2012_v53  ;;  %v427_v42 = vand.u32 4294901760, %v426_v25 }
  0x49   :  { %517 = vmatpush.msra.mxu3 %v2015_v54  ;;  %321 = vmatpush.msra.mxu0 %v2015_v54 }
  0x4a   :  { %404 = vmatpush.msra.mxu1 %v403_v43  ;;  %478 = vmatpush.msra.mxu2 %v2025_v58  ;;  %v2059_v43 = vand.u32 127, %v43_v32 }
  0x4b   :  { %519 = vmatpush.msra.mxu3 %v2027_v59  ;;  %323 = vmatpush.msra.mxu0 %v2027_v59 }
  0x4c   :  { %410 = vmatpush.msra.mxu1 %v409_v61  ;;  %481 = vmatpush.msra.mxu2 %v2036_v5  ;;  %v2084_v55 = vadd.s32 128, %v2059_v43  ;;  %v2087_v56 = vadd.s32 256, %v2059_v43  ;;  %v677_v61 = vsub.f32 %v2067_v22, %v676_v26 }
  0x4d   :  { %530 = vmatpush.msrb.mxu0 %v335_v28  ;;  %v258_v28 = vld [vmem:[#allocation5 + $0xf0] sm:$0xff] }
  0x4e   :  { %416 = vmatpush.msra.mxu1 %v415_v9  ;;  %634 = vmatpush.msrb.mxu2 %v2057_v21  ;;  %v2064_v45 = vand.u32 4294901760, %v258_v28  ;;  %v2105_v9 = vand.u32 4294901760, %v256_v51  ;;  %v678_v13 = vand.u32 4294901760, %v677_v61  ;;  %v247_v61 = vld [vmem:[#allocation5 + $0x98] sm:$0xff] }
  0x4f   :  { %534 = vmatpush.msrb.mxu0 %v341_v29  ;;  %v257_v29 = vld [vmem:[#allocation5 + $0xe8] sm:$0xff]  ;;  %v2397_v15 = vand.u32 4294901760, %v247_v61 }
  0x50   :  { %422 = vmatpush.msra.mxu1 %v421_v17  ;;  %v2074_v47 = vand.u32 4294901760, %v257_v29  ;;  %636 = vmatpush.msrb.mxu2 %v2064_v45 }
  0x51   :  { %538 = vmatpush.msrb.mxu0 %v347_v30  ;;  %679 = vmatpush.msrb.mxu3 %v678_v13  ;;  %v252_v13 = vld [vmem:[#allocation5 + $0xc0] sm:$0xff]  ;;  %v2440_v53 = vsub.f32 %v247_v61, %v2397_v15 }
  0x52   :  { %428 = vmatpush.msra.mxu1 %v427_v42  ;;  %v2094_v31 = vsub.f32 %v257_v29, %v2074_v47  ;;  %638 = vmatpush.msrb.mxu2 %v2074_v47  ;;  %v253_v42 = vld [vmem:[#allocation5 + $0xc8] sm:$0xff] }
  0x53   :  { %542 = vmatpush.msrb.mxu0 %v353_v34  ;;  %v2081_v34 = vsub.f32 %v258_v28, %v2064_v45 }
  0x54   :  { %597 = vmatpush.msrb.mxu1 %v1847_v10  ;;  %v2090_v10 = vadd.s32 384, %v2059_v43  ;;  %640 = vmatpush.msrb.mxu2 %v2105_v9  ;;  %v3196_v17 = vand.u32 4294901760, %v2094_v31 }
  0x55   :  { %546 = vmatpush.msrb.mxu0 %v359_v38  ;;  %v682_v0 = vand.u32 4294901760, %v2081_v34 }
  0x56   :  { %599 = vmatpush.msrb.mxu1 %v1849_v11  ;;  %v255_v11 = vld [vmem:[#allocation5 + $0xd8] sm:$0xff]  ;;  %v689_v28 = vsub.f32 %v2094_v31, %v3196_v17 }
  0x57   :  { %550 = vmatpush.msrb.mxu0 %v365_v44  ;;  %v2131_v25 = vand.u32 4294901760, %v255_v11 }
  0x58   :  { %601 = vmatpush.msrb.mxu1 %v1851_v12  ;;  %v683_v12 = vsub.f32 %v2081_v34, %v682_v0  ;;  %v690_v17 = vand.u32 4294901760, %v689_v28 }
  0x59   :  { %554 = vmatpush.msrb.mxu0 %v371_v48  ;;  %v2161_v29 = vsub.f32 %v255_v11, %v2131_v25  ;;  %642 = vmatpush.msrb.mxu2 %v2131_v25  ;;  %v2179_v11 = vsub.f32 %v254_v35, %v2145_v36 }
  0x5a   :  { %603 = vmatpush.msrb.mxu1 %v1853_v18  ;;  %v2143_v18 = vsub.f32 %v256_v51, %v2105_v9  ;;  %v684_v48 = vand.u32 4294901760, %v683_v12  ;;  %v2163_v51 = vand.u32 4294901760, %v253_v42 }
  0x5b   :  { %558 = vmatpush.msrb.mxu0 %v377_v1  ;;  %644 = vmatpush.msrb.mxu2 %v2145_v36  ;;  %v700_v35 = vand.u32 4294901760, %v2161_v29  ;;  %v706_v44 = vand.u32 4294901760, %v2179_v11 }
  0x5c   :  { %605 = vmatpush.msrb.mxu1 %v1855_v19  ;;  %v3197_v19 = vand.u32 4294901760, %v2143_v18  ;;  %685 = vmatpush.msrb.mxu3 %v684_v48  ;;  %v2219_v48 = vand.u32 4294901760, %v252_v13  ;;  %v2222_v28 = vsub.f32 %v253_v42, %v2163_v51 }
  0x5d   :  { %562 = vmatpush.msrb.mxu0 %v383_v6  ;;  %646 = vmatpush.msrb.mxu2 %v2163_v51  ;;  %v707_v42 = vsub.f32 %v2179_v11, %v706_v44 }
  0x5e   :  { %607 = vmatpush.msrb.mxu1 %v1868_v24  ;;  %v695_v1 = vsub.f32 %v2143_v18, %v3197_v19  ;;  %v251_v24 = vld [vmem:[#allocation5 + $0xb8] sm:$0xff]  ;;  %691 = vmatpush.msrb.mxu3 %v690_v17  ;;  %v701_v17 = vsub.f32 %v2161_v29, %v700_v35  ;;  %v712_v39 = vand.u32 4294901760, %v2222_v28 }
  0x5f   :  { %v2224_v19 = vand.u32 4294901760, %v251_v24  ;;  %648 = vmatpush.msrb.mxu2 %v2219_v48  ;;  %566 = vmatpush.msrb.mxu0 %v389_v14 }
  0x60   :  { %609 = vmatpush.msrb.mxu1 %v1874_v27  ;;  %v702_v14 = vand.u32 4294901760, %v701_v17  ;;  %v248_v17 = vld [vmem:[#allocation5 + $0xa0] sm:$0xff] }
  0x61   :  { %650 = vmatpush.msrb.mxu2 %v2224_v19  ;;  %570 = vmatpush.msrb.mxu0 %v395_v20 }
  0x62   :  { %611 = vmatpush.msrb.mxu1 %v1941_v60  ;;  %v250_v60 = vld [vmem:[#allocation5 + $0xb0] sm:$0xff] }
  0x63   :  { %v2270_v62 = vand.u32 4294901760, %v250_v60  ;;  %574 = vmatpush.msrb.mxu0 %v401_v41  ;;  %v244_v41 = vld [vmem:[#allocation5 + $0x80] sm:$0xff] }
  0x64   :  { %613 = vmatpush.msrb.mxu1 %v1946_v63  ;;  %v708_v63 = vand.u32 4294901760, %v707_v42 }
  0x65   :  { %652 = vmatpush.msrb.mxu2 %v2270_v62  ;;  %578 = vmatpush.msrb.mxu0 %v407_v52  ;;  %v245_v52 = vld [vmem:[#allocation5 + $0x88] sm:$0xff] }
  0x66   :  { %615 = vmatpush.msrb.mxu1 %v1955_v3 }
  0x67   :  { %582 = vmatpush.msrb.mxu0 %v413_v57 }
  0x68   :  { %v2071_v30 = vpop.permute.xlu2 %89  ;;  %617 = vmatpush.msrb.mxu1 %v1967_v8 }
  0x69   :  { %586 = vmatpush.msrb.mxu0 %v419_v4  ;;  %v2477_v4 = vand.u32 4294901760, %v244_v41 }
  0x6a   :  { %619 = vmatpush.msrb.mxu1 %v1989_v37  ;;  %v246_v37 = vld [vmem:[#allocation5 + $0x90] sm:$0xff] }
  0x6b   :  { %v2402_v49 = vand.u32 4294901760, %v246_v37  ;;  %590 = vmatpush.msrb.mxu0 %v425_v16 }
  0x6c   :  { %621 = vmatpush.msrb.mxu1 %v2001_v46 }
  0x6d   :  { %v2443_v57 = vsub.f32 %v246_v37, %v2402_v49 }
  0x6e   :  { %623 = vmatpush.msrb.mxu1 %v2006_v50 }
  0x6f   :  { %v3198_v58 = vand.u32 4294901760, %v2443_v57 }
  0x70   :  { %625 = vmatpush.msrb.mxu1 %v2015_v54  ;;  %v748_v54 = vand.u32 4294901760, %v2440_v53 }
  0x72   :  { %v2191_v12 = vpop.permute.xlu2 %100  ;;  %627 = vmatpush.msrb.mxu1 %v2027_v59  ;;  %v755_v59 = vsub.f32 %v2443_v57, %v3198_v58 }
  0x74   :  { %v756_v58 = vand.u32 4294901760, %v755_v59 }
  0x7b   :  { %v2321_v6 = vpop.permute.xlu2 %122 }
  0x7f   :  { %v2069_v23 = vpop.permute.xlu1 %67 }
  0x80   :  { %v2051_v33 = vpop.permute.xlu0 %49  ;;  %vm69_vm11 = vcmp.eq.s32.totalorder %v2059_v43, %v2069_v23  ;;  %vm70_vm13 = vcmp.eq.s32.totalorder %v2084_v55, %v2069_v23  ;;  %vm71_vm15 = vcmp.eq.s32.totalorder %v2087_v56, %v2069_v23 }
  0x81   :  { %vm51_vm0 = vcmp.eq.s32.totalorder %v2059_v43, %v2051_v33  ;;  %vm52_vm1 = vcmp.eq.s32.totalorder %v2084_v55, %v2051_v33  ;;  %vm53_vm2 = vcmp.eq.s32.totalorder %v2087_v56, %v2051_v33  ;;  %vm54_vm3 = vcmp.eq.s32.totalorder %v2090_v10, %v2051_v33 }
  0x82   :  { %v2268_v33 = vsub.f32 %v252_v13, %v2219_v48  ;;  %v713_v13 = vsub.f32 %v2222_v28, %v712_v39 }
  0x84   :  { %v718_v32 = vand.u32 4294901760, %v2268_v33  ;;  %v714_v27 = vand.u32 4294901760, %v713_v13  ;;  %v156_v13 = vpop.permute.xlu2 %155 }
  0x86   :  { %v719_v42 = vsub.f32 %v2268_v33, %v718_v32 }
  0x89   :  { %v57_v38 = vpop.permute.xlu0 %56 }
  0x8a   :  { %vm58_vm4 = vcmp.eq.s32.totalorder %v2059_v43, %v57_v38  ;;  %vm59_vm5 = vcmp.eq.s32.totalorder %v2084_v55, %v57_v38  ;;  %vm60_vm6 = vcmp.eq.s32.totalorder %v2087_v56, %v57_v38  ;;  %vm61_vm7 = vcmp.eq.s32.totalorder %v2090_v10, %v57_v38  ;;  %v79_v38 = vpop.permute.xlu1 %78 }
  0x8b   :  { %vm2122_vm8 = vmor %vm51_vm0, %vm58_vm4 }
  0x8c   :  { %vm2138_vm9 = vmor %vm52_vm1, %vm59_vm5  ;;  %vm72_vm1 = vcmp.eq.s32.totalorder %v2090_v10, %v2069_v23  ;;  %vm81_vm5 = vcmp.eq.s32.totalorder %v2084_v55, %v79_v38  ;;  %v696_v23 = vand.u32 4294901760, %v695_v1  ;;  %v2273_v1 = vsub.f32 %v251_v24, %v2224_v19 }
  0x8d   :  { %vm2152_vm10 = vmor %vm53_vm2, %vm60_vm6  ;;  %vm82_vm6 = vcmp.eq.s32.totalorder %v2087_v56, %v79_v38 }
  0x8e   :  { %vm2172_vm12 = vmor %vm54_vm3, %vm61_vm7  ;;  %vm80_vm3 = vcmp.eq.s32.totalorder %v2059_v43, %v79_v38  ;;  %697 = vmatpush.msrb.mxu3 %v696_v23  ;;  %v724_v3 = vand.u32 4294901760, %v2273_v1 }
  0x8f   :  { %vm2187_vm14 = vmor %vm2122_vm8, %vm69_vm11  ;;  %vm91_vm11 = vcmp.eq.s32.totalorder %v2059_v43, %v2071_v30 }
  0x90   :  { %vm2198_vm0 = vmor %vm2138_vm9, %vm70_vm13  ;;  %vm83_vm9 = vcmp.eq.s32.totalorder %v2090_v10, %v79_v38  ;;  %v249_v38 = vld [vmem:[#allocation5 + $0xa8] sm:$0xff]  ;;  %vm92_vm13 = vcmp.eq.s32.totalorder %v2084_v55, %v2071_v30  ;;  %703 = vmatpush.msrb.mxu3 %v702_v14  ;;  %v2328_v14 = vsub.f32 %v250_v60, %v2270_v62  ;;  %v725_v8 = vsub.f32 %v2273_v1, %v724_v3 }
  0x91   :  { %vm2214_vm2 = vmor %vm2152_vm10, %vm71_vm15  ;;  %vm93_vm15 = vcmp.eq.s32.totalorder %v2087_v56, %v2071_v30  ;;  %v2309_v23 = vand.u32 4294901760, %v249_v38  ;;  %v2344_v60 = vand.u32 4294901760, %v248_v17 }
  0x92   :  { %vm2229_vm4 = vmor %vm2172_vm12, %vm72_vm1  ;;  %vm94_vm1 = vcmp.eq.s32.totalorder %v2090_v10, %v2071_v30  ;;  %v2319_v20 = vpop.permute.xlu1 %111  ;;  %709 = vmatpush.msrb.mxu3 %v708_v63  ;;  %v720_v63 = vand.u32 4294901760, %v719_v42  ;;  %v730_v24 = vand.u32 4294901760, %v2328_v14  ;;  %v2422_v30 = vand.u32 4294901760, %v245_v52 }
  0x93   :  { %vm2238_vm7 = vmor %vm2187_vm14, %vm80_vm3  ;;  %654 = vmatpush.msrb.mxu2 %v2309_v23  ;;  %v2347_v40 = vsub.f32 %v249_v38, %v2309_v23  ;;  %v726_v38 = vand.u32 4294901760, %v725_v8  ;;  %v2400_v46 = vsub.f32 %v248_v17, %v2344_v60  ;;  %v749_v8 = vsub.f32 %v2440_v53, %v748_v54 }
  0x94   :  { %vm2245_vm8 = vmor %vm2198_vm0, %vm81_vm5  ;;  %vm103_vm5 = vcmp.eq.s32.totalorder %v2084_v55, %v2191_v12  ;;  %715 = vmatpush.msrb.mxu3 %v714_v27  ;;  %v731_v17 = vsub.f32 %v2328_v14, %v730_v24  ;;  %v2458_v37 = vsub.f32 %v245_v52, %v2422_v30 }
  0x95   :  { %vm2262_vm10 = vmor %vm2214_vm2, %vm82_vm6  ;;  %vm104_vm6 = vcmp.eq.s32.totalorder %v2087_v56, %v2191_v12  ;;  %656 = vmatpush.msrb.mxu2 %v2344_v60  ;;  %v736_v2 = vand.u32 4294901760, %v2347_v40  ;;  %v742_v50 = vand.u32 4294901760, %v2400_v46 }
  0x96   :  { %vm2279_vm12 = vmor %vm2229_vm4, %vm83_vm9  ;;  %vm102_vm4 = vcmp.eq.s32.totalorder %v2059_v43, %v2191_v12  ;;  %721 = vmatpush.msrb.mxu3 %v720_v63  ;;  %v134_v63 = vpop.permute.xlu0 %133 }
  0x97   :  { %vm2291_vm14 = vmor %vm2238_vm7, %vm91_vm11  ;;  %vm124_vm11 = vcmp.eq.s32.totalorder %v2059_v43, %v2321_v6  ;;  %v737_v42 = vsub.f32 %v2347_v40, %v736_v2  ;;  %658 = vmatpush.msrb.mxu2 %v2397_v15 }
  0x98   :  { %vm2303_vm0 = vmor %vm2245_vm8, %vm92_vm13  ;;  %vm105_vm8 = vcmp.eq.s32.totalorder %v2090_v10, %v2191_v12  ;;  %vm114_vm13 = vcmp.eq.s32.totalorder %v2084_v55, %v2319_v20  ;;  %727 = vmatpush.msrb.mxu3 %v726_v38  ;;  %v732_v38 = vand.u32 4294901760, %v731_v17  ;;  %v743_v17 = vsub.f32 %v2400_v46, %v742_v50 }
  0x99   :  { %vm2315_vm2 = vmor %vm2262_vm10, %vm93_vm15  ;;  %vm113_vm10 = vcmp.eq.s32.totalorder %v2059_v43, %v2319_v20  ;;  %vm115_vm15 = vcmp.eq.s32.totalorder %v2087_v56, %v2319_v20  ;;  %v738_v61 = vand.u32 4294901760, %v737_v42  ;;  %660 = vmatpush.msrb.mxu2 %v2402_v49 }
  0x9a   :  { %vm2334_vm3 = vmor %vm2279_vm12, %vm94_vm1  ;;  %v145_v27 = vpop.permute.xlu1 %144  ;;  %733 = vmatpush.msrb.mxu3 %v732_v38  ;;  %v744_v42 = vand.u32 4294901760, %v743_v17  ;;  %v760_v38 = vand.u32 4294901760, %v2458_v37  ;;  %v750_v17 = vand.u32 4294901760, %v749_v8  ;;  %v1816_v8 = vmov 0.0  }
  0x9b   :  { %vm2355_vm7 = vmor %vm2291_vm14, %vm102_vm4  ;;  %662 = vmatpush.msrb.mxu2 %v2422_v30 }
  0x9c   :  { %vm2364_vm9 = vmor %vm2303_vm0, %vm103_vm5  ;;  %vm116_vm0 = vcmp.eq.s32.totalorder %v2090_v10, %v2319_v20  ;;  %vm126_vm5 = vcmp.eq.s32.totalorder %v2087_v56, %v2321_v6  ;;  %739 = vmatpush.msrb.mxu3 %v738_v61  ;;  %v2530_v61 = vsub.f32 %v244_v41, %v2477_v4  ;;  %v761_v5 = vsub.f32 %v2458_v37, %v760_v38 }
  0x9d   :  { %vm2375_vm12 = vmor %vm2315_vm2, %vm104_vm6  ;;  %664 = vmatpush.msrb.mxu2 %v2477_v4 }
  0x9e   :  { %vm2391_vm14 = vmor %vm2334_vm3, %vm105_vm8  ;;  %vm125_vm3 = vcmp.eq.s32.totalorder %v2084_v55, %v2321_v6  ;;  %745 = vmatpush.msrb.mxu3 %v744_v42  ;;  %v766_v16 = vand.u32 4294901760, %v2530_v61  ;;  %v762_v41 = vand.u32 4294901760, %v761_v5 }
  0x9f   :  { %vm2411_vm1 = vmor %vm2355_vm7, %vm113_vm10  ;;  %vm127_vm7 = vcmp.eq.s32.totalorder %v2090_v10, %v2321_v6  ;;  %vm135_vm10 = vcmp.eq.s32.totalorder %v2059_v43, %v134_v63 }
  0xa0   :  { %vm2431_vm2 = vmor %vm2364_vm9, %vm114_vm13  ;;  %751 = vmatpush.msrb.mxu3 %v750_v17  ;;  %v767_v20 = vsub.f32 %v2530_v61, %v766_v16 }
  0xa1   :  { %vm2450_vm4 = vmor %vm2375_vm12, %vm115_vm15  ;;  %vm136_vm12 = vcmp.eq.s32.totalorder %v2084_v55, %v134_v63  ;;  %vm138_vm15 = vcmp.eq.s32.totalorder %v2090_v10, %v134_v63 }
  0xa2   :  { %vm2467_vm6 = vmor %vm2391_vm14, %vm116_vm0  ;;  %vm137_vm14 = vcmp.eq.s32.totalorder %v2087_v56, %v134_v63  ;;  %757 = vmatpush.msrb.mxu3 %v756_v58  ;;  %v768_v52 = vand.u32 4294901760, %v767_v20  ;;  %v178_v58 = vpop.permute.xlu2 %177  ;;  %v3283_v20 = vand.u32 4294901760, %v2094_v31 }
  0xa3   :  { %vm2486_vm8 = vmor %vm2411_vm1, %vm124_vm11  ;;  %v167_v63 = vpop.permute.xlu1 %166 }
  0xa4   :  { %vm2495_vm9 = vmor %vm2431_vm2, %vm125_vm3  ;;  %vm146_vm2 = vcmp.eq.s32.totalorder %v2059_v43, %v145_v27  ;;  %763 = vmatpush.msrb.mxu3 %v762_v41 }
  0xa5   :  { %vm2507_vm11 = vmor %vm2450_vm4, %vm126_vm5  ;;  %vm147_vm4 = vcmp.eq.s32.totalorder %v2084_v55, %v145_v27 }
  0xa6   :  { %vm2524_vm13 = vmor %vm2467_vm6, %vm127_vm7  ;;  %vm148_vm6 = vcmp.eq.s32.totalorder %v2087_v56, %v145_v27  ;;  %vm149_vm7 = vcmp.eq.s32.totalorder %v2090_v10, %v145_v27  ;;  %769 = vmatpush.msrb.mxu3 %v768_v52  ;;  %v189_v27 = vpop.permute.xlu0 %188 }
  0xa7   :  { %vm2539_vm0 = vmor %vm2486_vm8, %vm135_vm10  ;;  %vm157_vm10 = vcmp.eq.s32.totalorder %v2059_v43, %v156_v13 }
  0xa8   :  { %vm140_vm1 = vmor %vm2495_vm9, %vm136_vm12 }
  0xa9   :  { %vm141_vm3 = vmor %vm2507_vm11, %vm137_vm14  ;;  %vm158_vm11 = vcmp.eq.s32.totalorder %v2084_v55, %v156_v13  ;;  %vm159_vm14 = vcmp.eq.s32.totalorder %v2087_v56, %v156_v13 }
  0xaa   :  { %vm142_vm5 = vmor %vm2524_vm13, %vm138_vm15  ;;  %vm160_vm15 = vcmp.eq.s32.totalorder %v2090_v10, %v156_v13  ;;  %v211_v42 = vpop.permute.xlu2 %210 }
  0xab   :  { %vm150_vm8 = vmor %vm2539_vm0, %vm146_vm2 }
  0xac   :  { %vm151_vm9 = vmor %vm140_vm1, %vm147_vm4  ;;  %vm168_vm1 = vcmp.eq.s32.totalorder %v2059_v43, %v167_v63  ;;  %v200_v12 = vpop.permute.xlu1 %199 }
  0xad   :  { %vm152_vm12 = vmor %vm141_vm3, %vm148_vm6  ;;  %vm169_vm3 = vcmp.eq.s32.totalorder %v2084_v55, %v167_v63 }
  0xae   :  { %vm153_vm13 = vmor %vm142_vm5, %vm149_vm7  ;;  %vm170_vm5 = vcmp.eq.s32.totalorder %v2087_v56, %v167_v63  ;;  %vm171_vm7 = vcmp.eq.s32.totalorder %v2090_v10, %v167_v63 }
  0xaf   :  { %vm161_vm0 = vmor %vm150_vm8, %vm157_vm10  ;;  %vm179_vm10 = vcmp.eq.s32.totalorder %v2059_v43, %v178_v58 }
  0xb0   :  { %vm162_vm2 = vmor %vm151_vm9, %vm158_vm11  ;;  %vm180_vm11 = vcmp.eq.s32.totalorder %v2084_v55, %v178_v58 }
  0xb1   :  { %vm163_vm4 = vmor %vm152_vm12, %vm159_vm14  ;;  %vm181_vm14 = vcmp.eq.s32.totalorder %v2087_v56, %v178_v58 }
  0xb2   :  { %vm164_vm6 = vmor %vm153_vm13, %vm160_vm15  ;;  %vm182_vm15 = vcmp.eq.s32.totalorder %v2090_v10, %v178_v58 }
  0xb3   :  { %vm172_vm8 = vmor %vm161_vm0, %vm168_vm1 }
  0xb4   :  { %vm173_vm9 = vmor %vm162_vm2, %vm169_vm3  ;;  %vm190_vm2 = vcmp.eq.s32.totalorder %v2059_v43, %v189_v27 }
  0xb5   :  { %vm174_vm12 = vmor %vm163_vm4, %vm170_vm5  ;;  %vm191_vm4 = vcmp.eq.s32.totalorder %v2084_v55, %v189_v27 }
  0xb6   :  { %vm175_vm13 = vmor %vm164_vm6, %vm171_vm7  ;;  %vm192_vm6 = vcmp.eq.s32.totalorder %v2087_v56, %v189_v27  ;;  %vm193_vm7 = vcmp.eq.s32.totalorder %v2090_v10, %v189_v27 }
  0xb7   :  { %vm183_vm0 = vmor %vm172_vm8, %vm179_vm10 }
  0xb8   :  { %vm184_vm1 = vmor %vm173_vm9, %vm180_vm11  ;;  %vm201_vm9 = vcmp.eq.s32.totalorder %v2059_v43, %v200_v12 }
  0xb9   :  { %vm185_vm3 = vmor %vm174_vm12, %vm181_vm14  ;;  %vm202_vm12 = vcmp.eq.s32.totalorder %v2084_v55, %v200_v12 }
  0xba   :  { %vm186_vm5 = vmor %vm175_vm13, %vm182_vm15  ;;  %vm203_vm13 = vcmp.eq.s32.totalorder %v2087_v56, %v200_v12  ;;  %vm204_vm15 = vcmp.eq.s32.totalorder %v2090_v10, %v200_v12 }
  0xbb   :  { %vm194_vm8 = vmor %vm183_vm0, %vm190_vm2 }
  0xbc   :  { %vm195_vm10 = vmor %vm184_vm1, %vm191_vm4  ;;  %vm213_vm1 = vcmp.eq.s32.totalorder %v2084_v55, %v211_v42 }
  0xbd   :  { %vm196_vm11 = vmor %vm185_vm3, %vm192_vm6  ;;  %vm215_vm3 = vcmp.eq.s32.totalorder %v2090_v10, %v211_v42 }
  0xbe   :  { %vm197_vm14 = vmor %vm186_vm5, %vm193_vm7  ;;  %vm212_vm5 = vcmp.eq.s32.totalorder %v2059_v43, %v211_v42  ;;  %vm214_vm7 = vcmp.eq.s32.totalorder %v2087_v56, %v211_v42 }
  0xbf   :  { %vm205_vm0 = vmor %vm194_vm8, %vm201_vm9 }
  0xc0   :  { %vm206_vm2 = vmor %vm195_vm10, %vm202_vm12 }
  0xc1   :  { %vm207_vm4 = vmor %vm196_vm11, %vm203_vm13 }
  0xc2   :  { %vm208_vm6 = vmor %vm197_vm14, %vm204_vm15 }
  0xc3   :  { %vm217_vm8 = vmor %vm206_vm2, %vm213_vm1 }
  0xc4   :  { %vm219_vm9 = vmor %vm208_vm6, %vm215_vm3  ;;  %v2591_v59 = vsel %vm217_vm8, 1.0, %v1816_v8 }
  0xc5   :  { %v2593_v7 = vsel %vm219_vm9, 1.0, %v1816_v8  ;;  %vm216_vm10 = vmor %vm205_vm0, %vm212_vm5  ;;  %v2597_v6 = vsub.f32 %v2591_v59, %v2591_v59 }
  0xc6   :  { %v1675_v55 = vsel %vm216_vm10, 1.0, %v1816_v8  ;;  %vm218_vm11 = vmor %vm207_vm4, %vm214_vm7 }
  0xc7   :  { %430 = vmatmul.f32.vlgmr.msra.gmra.mxu1 %v1675_v55  ;;  %v325_v10 = vsub.f32 %v1675_v55, %v1675_v55  ;;  %v667_v43 = vand.u32 4294901760, %v2597_v6  ;;  %v2601_v56 = vsel %vm218_vm11, 1.0, %v1816_v8  ;;  %v265_v8 = vld [vmem:[#allocation5 + $0x128] sm:$0xff] }
  0xc8   :  { %830 = vmatpush.msra.mxu1 %v2057_v21 }
  0xc9   :  { %484 = vmatmul.f32.vlgmr.msra.gmra.mxu2 %v325_v10  ;;  %v326_v13 = vand.u32 4294901760, %v325_v10  ;;  %v668_v5 = vsub.f32 %v2597_v6, %v667_v43 }
  0xca   :  { %832 = vmatpush.msra.mxu1 %v2064_v45  ;;  %871 = vmatpush.msra.mxu2 %v676_v26 }
  0xcb   :  { %523 = vmatmul.f32.vlgmr.msra.gmra.mxu3 %v326_v13  ;;  %v327_v17 = vsub.f32 %v325_v10, %v326_v13  ;;  %v669_v26 = vand.u32 4294901760, %v668_v5  ;;  %v264_v13 = vld [vmem:[#allocation5 + $0x120] sm:$0xff]  ;;  %v263_v5 = vld [vmem:[#allocation5 + $0x118] sm:$0xff] }
  0xcc   :  { %834 = vmatpush.msra.mxu1 %v2074_v47  ;;  %875 = vmatpush.msra.mxu2 %v682_v0  ;;  %v3284_v0 = vand.u32 4294901760, %v2143_v18 }
  0xcd   :  { %938 = vmatpush.msra.mxu3 %v2057_v21  ;;  %v328_v41 = vand.u32 4294901760, %v327_v17  ;;  %v275_v21 = vld [vmem:[#allocation5 + $0x178] sm:$0xff] }
  0xce   :  { %836 = vmatpush.msra.mxu1 %v2105_v9  ;;  %879 = vmatpush.msra.mxu2 %v3283_v20  ;;  %v2766_v20 = vand.u32 4294901760, %v264_v13 }
  0xcf   :  { %940 = vmatpush.msra.mxu3 %v2064_v45  ;;  %329 = vmatmul.f32.vlgmr.msra.gmra.mxu0 %v328_v41  ;;  %v274_v45 = vld [vmem:[#allocation5 + $0x170] sm:$0xff] }
  0xd0   :  { %629 = vmatmul.f32.vlgmr.msrb.gmra.mxu1 %v1675_v55  ;;  %777 = vmatpush.msra.mxu0 %v2067_v22  ;;  %v2634_v22 = vand.u32 4294901760, %v275_v21 }
  0xd1   :  { %838 = vmatpush.msra.mxu1 %v2131_v25  ;;  %883 = vmatpush.msra.mxu2 %v3284_v0 }
  0xd2   :  { %942 = vmatpush.msra.mxu3 %v2074_v47  ;;  %670 = vmatmul.f32.vlgmr.msrb.gmra.mxu2 %v669_v26  ;;  %v273_v47 = vld [vmem:[#allocation5 + $0x168] sm:$0xff] }
  0xd3   :  { %780 = vmatpush.msra.mxu0 %v2081_v34  ;;  %840 = vmatpush.msra.mxu1 %v2145_v36  ;;  %v2640_v34 = vand.u32 4294901760, %v274_v45 }
  0xd4   :  { %887 = vmatpush.msra.mxu2 %v700_v35  ;;  %944 = vmatpush.msra.mxu3 %v2105_v9  ;;  %v2648_v9 = vsub.f32 %v275_v21, %v2634_v22 }
  0xd5   :  { %771 = vmatmul.f32.vlgmr.msrb.gmra.mxu3 %v2591_v59  ;;  %783 = vmatpush.msra.mxu0 %v2094_v31  ;;  %v272_v31 = vld [vmem:[#allocation5 + $0x160] sm:$0xff] }
  0xd6   :  { %842 = vmatpush.msra.mxu1 %v2163_v51  ;;  %891 = vmatpush.msra.mxu2 %v706_v44  ;;  %v270_v44 = vld [vmem:[#allocation5 + $0x150] sm:$0xff] }
  0xd7   :  { %946 = vmatpush.msra.mxu3 %v2131_v25  ;;  %786 = vmatpush.msra.mxu0 %v2143_v18  ;;  %v2650_v25 = vand.u32 4294901760, %v273_v47  ;;  %v271_v18 = vld [vmem:[#allocation5 + $0x158] sm:$0xff] }
  0xd8   :  { %844 = vmatpush.msra.mxu1 %v2219_v48  ;;  %895 = vmatpush.msra.mxu2 %v712_v39  ;;  %v2671_v35 = vand.u32 4294901760, %v271_v18  ;;  %v2684_v39 = vand.u32 4294901760, %v270_v44 }
  0xd9   :  { %948 = vmatpush.msra.mxu3 %v2145_v36  ;;  %592 = vmatmul.f32.vlgmr.msrb.gmra.mxu0 %v1675_v55  ;;  %v2658_v36 = vsub.f32 %v274_v45, %v2640_v34  ;;  %v2778_v45 = vand.u32 4294901760, %v263_v5 }
  0xda   :  { %789 = vmatpush.msra.mxu0 %v2161_v29  ;;  %846 = vmatpush.msra.mxu1 %v2224_v19  ;;  %v2660_v29 = vand.u32 4294901760, %v272_v31 }
  0xdb   :  { %899 = vmatpush.msra.mxu2 %v718_v32  ;;  %950 = vmatpush.msra.mxu3 %v2163_v51  ;;  %v3216_v51 = vand.u32 4294901760, %v2648_v9 }
  0xdc   :  { %792 = vmatpush.msra.mxu0 %v2179_v11  ;;  %848 = vmatpush.msra.mxu1 %v2270_v62  ;;  %v2669_v11 = vsub.f32 %v273_v47, %v2650_v25  ;;  %v261_v47 = vld [vmem:[#allocation5 + $0x108] sm:$0xff] }
  0xdd   :  { %903 = vmatpush.msra.mxu2 %v724_v3  ;;  %952 = vmatpush.msra.mxu3 %v2219_v48  ;;  %v269_v48 = vld [vmem:[#allocation5 + $0x148] sm:$0xff]  ;;  %v2694_v3 = vsub.f32 %v271_v18, %v2671_v35 }
  0xde   :  { %795 = vmatpush.msra.mxu0 %v2222_v28  ;;  %850 = vmatpush.msra.mxu1 %v2309_v23  ;;  %v2680_v28 = vsub.f32 %v272_v31, %v2660_v29  ;;  %v3213_v32 = vand.u32 4294901760, %v2669_v11 }
  0xdf   :  { %907 = vmatpush.msra.mxu2 %v730_v24  ;;  %954 = vmatpush.msra.mxu3 %v2224_v19  ;;  %v3215_v19 = vand.u32 4294901760, %v2658_v36  ;;  %v3211_v63 = vand.u32 4294901760, %v2694_v3 }
  0xe0   :  { %798 = vmatpush.msra.mxu0 %v2268_v33  ;;  %852 = vmatpush.msra.mxu1 %v2344_v60  ;;  %v268_v33 = vld [vmem:[#allocation5 + $0x140] sm:$0xff]  ;;  %v3212_v24 = vand.u32 4294901760, %v2680_v28  ;;  %v1030_v52 = vsub.f32 %v2669_v11, %v3213_v32  ;;  %v282_v32 = vld [vmem:[#allocation5 + $0x1b0] sm:$0xff] }
  0xe1   :  { %911 = vmatpush.msra.mxu2 %v736_v2  ;;  %956 = vmatpush.msra.mxu3 %v2270_v62  ;;  %v1018_v62 = vsub.f32 %v2648_v9, %v3216_v51  ;;  %v2707_v2 = vand.u32 4294901760, %v268_v33  ;;  %v280_v51 = vld [vmem:[#allocation5 + $0x1a0] sm:$0xff] }
  0xe2   :  { %801 = vmatpush.msra.mxu0 %v2273_v1  ;;  %854 = vmatpush.msra.mxu1 %v2397_v15  ;;  %v2696_v1 = vand.u32 4294901760, %v269_v48  ;;  %v1036_v12 = vsub.f32 %v2680_v28, %v3212_v24  ;;  %v2948_v24 = vand.u32 4294901760, %v282_v32 }
  0xe3   :  { %915 = vmatpush.msra.mxu2 %v742_v50  ;;  %958 = vmatpush.msra.mxu3 %v2309_v23  ;;  %v1024_v23 = vsub.f32 %v2658_v36, %v3215_v19  ;;  %v267_v50 = vld [vmem:[#allocation5 + $0x138] sm:$0xff]  ;;  %v2735_v42 = vsub.f32 %v268_v33, %v2707_v2  ;;  %v260_v33 = vld [vmem:[#allocation5 + $0x100] sm:$0xff] }
  0xe4   :  { %804 = vmatpush.msra.mxu0 %v2328_v14  ;;  %856 = vmatpush.msra.mxu1 %v2402_v49  ;;  %v2712_v14 = vsub.f32 %v270_v44, %v2684_v39  ;;  %v2722_v58 = vsub.f32 %v269_v48, %v2696_v1  ;;  %v2726_v27 = vand.u32 4294901760, %v267_v50  ;;  %v2788_v44 = vsub.f32 %v264_v13, %v2766_v20 }
  0xe5   :  { %919 = vmatpush.msra.mxu2 %v748_v54  ;;  %960 = vmatpush.msra.mxu3 %v2344_v60  ;;  %v3285_v54 = vand.u32 4294901760, %v2443_v57  ;;  %v1019_v60 = vand.u32 4294901760, %v1018_v62  ;;  %v3207_v17 = vand.u32 4294901760, %v2735_v42 }
  0xe6   :  { %807 = vmatpush.msra.mxu0 %v2347_v40  ;;  %858 = vmatpush.msra.mxu1 %v2422_v30  ;;  %v266_v40 = vld [vmem:[#allocation5 + $0x130] sm:$0xff]  ;;  %v3209_v10 = vand.u32 4294901760, %v2722_v58 }
  0xe7   :  { %923 = vmatpush.msra.mxu2 %v3285_v54  ;;  %962 = vmatpush.msra.mxu3 %v2397_v15  ;;  %v1025_v15 = vand.u32 4294901760, %v1024_v23  ;;  %v2741_v55 = vand.u32 4294901760, %v266_v40  ;;  %v2802_v54 = vand.u32 4294901760, %v261_v47 }
  0xe8   :  { %810 = vmatpush.msra.mxu0 %v2400_v46  ;;  %860 = vmatpush.msra.mxu1 %v2477_v4  ;;  %v3210_v46 = vand.u32 4294901760, %v2712_v14  ;;  %v1054_v0 = vsub.f32 %v2722_v58, %v3209_v10 }
  0xe9   :  { %927 = vmatpush.msra.mxu2 %v760_v38  ;;  %964 = vmatpush.msra.mxu3 %v2402_v49  ;;  %v1031_v49 = vand.u32 4294901760, %v1030_v52  ;;  %v1042_v38 = vsub.f32 %v2694_v3, %v3211_v63  ;;  %v2764_v41 = vsub.f32 %v266_v40, %v2741_v55  ;;  %v2814_v40 = vand.u32 4294901760, %v260_v33 }
  0xea   :  { %864 = vmatmul.f32.vlgmr.msra.gmra.mxu1 %v667_v43  ;;  %813 = vmatpush.msra.mxu0 %v2440_v53  ;;  %v2752_v53 = vsub.f32 %v267_v50, %v2726_v27  ;;  %v2754_v43 = vand.u32 4294901760, %v265_v8  ;;  %v2800_v50 = vsub.f32 %v263_v5, %v2778_v45 }
  0xeb   :  { %1020 = vmatpush.msrb.mxu1 %v1019_v60  ;;  %931 = vmatpush.msra.mxu2 %v766_v16  ;;  %v1037_v16 = vand.u32 4294901760, %v1036_v12  ;;  %v1043_v26 = vand.u32 4294901760, %v1042_v38  ;;  %v3205_v18 = vand.u32 4294901760, %v2764_v41  ;;  %v3203_v60 = vand.u32 4294901760, %v2788_v44 }
  0xec   :  { %966 = vmatpush.msra.mxu3 %v2422_v30  ;;  %933 = vmatmul.f32.vlgmr.msra.gmra.mxu2 %v2591_v59  ;;  %v1048_v30 = vsub.f32 %v2712_v14, %v3210_v46  ;;  %v2776_v21 = vsub.f32 %v265_v8, %v2754_v43  ;;  %v3202_v8 = vand.u32 4294901760, %v2800_v50  ;;  %v2834_v5 = vsub.f32 %v260_v33, %v2814_v40 }
  0xed   :  { %1026 = vmatpush.msrb.mxu1 %v1025_v15  ;;  %1118 = vmatpush.msrb.mxu2 %v2648_v9  ;;  %v1084_v13 = vsub.f32 %v2788_v44, %v3203_v60  ;;  %v285_v60 = vld [vmem:[#allocation5 + $0x1c8] sm:$0xff] }
  0xee   :  { %816 = vmatpush.msra.mxu0 %v2443_v57  ;;  %968 = vmatpush.msra.mxu3 %v2477_v4  ;;  %v262_v57 = vld [vmem:[#allocation5 + $0x110] sm:$0xff]  ;;  %v3206_v4 = vand.u32 4294901760, %v2752_v53  ;;  %v1049_v31 = vand.u32 4294901760, %v1048_v30  ;;  %v3204_v23 = vand.u32 4294901760, %v2776_v21  ;;  %v291_v30 = vld [vmem:[#allocation5 + $0x1f8] sm:$0xff] }
  0xef   :  { %970 = vmatmul.f32.vlgmr.msra.gmra.mxu3 %v2591_v59  ;;  %1032 = vmatpush.msrb.mxu1 %v1031_v49  ;;  %v1060_v59 = vsub.f32 %v2735_v42, %v3207_v17  ;;  %v2790_v48 = vand.u32 4294901760, %v262_v57  ;;  %v2824_v49 = vsub.f32 %v261_v47, %v2802_v54  ;;  %v1085_v47 = vand.u32 4294901760, %v1084_v13 }
  0xf0   :  { %1121 = vmatpush.msrb.mxu2 %v2658_v36  ;;  %1171 = vmatpush.msrb.mxu3 %v2634_v22  ;;  %v1066_v62 = vsub.f32 %v2752_v53, %v3206_v4  ;;  %v1078_v12 = vsub.f32 %v2776_v21, %v3204_v23  ;;  %v2850_v33 = vand.u32 4294901760, %v291_v30  ;;  %v2911_v17 = vand.u32 4294901760, %v285_v60 }
  0xf1   :  { %819 = vmatpush.msra.mxu0 %v2458_v37  ;;  %1038 = vmatpush.msrb.mxu1 %v1037_v16  ;;  %v1055_v37 = vand.u32 4294901760, %v1054_v0  ;;  %v2812_v52 = vsub.f32 %v262_v57, %v2790_v48  ;;  %v1090_v0 = vsub.f32 %v2800_v50, %v3202_v8  ;;  %v3199_v57 = vand.u32 4294901760, %v2824_v49 }
  0xf2   :  { %1124 = vmatpush.msrb.mxu2 %v2669_v11  ;;  %1173 = vmatpush.msrb.mxu3 %v2640_v34  ;;  %v1067_v15 = vand.u32 4294901760, %v1066_v62  ;;  %v2867_v13 = vsub.f32 %v291_v30, %v2850_v33 }
  0xf3   :  { %822 = vmatpush.msra.mxu0 %v2530_v61  ;;  %1044 = vmatpush.msrb.mxu1 %v1043_v26  ;;  %v1061_v61 = vand.u32 4294901760, %v1060_v59  ;;  %v3201_v16 = vand.u32 4294901760, %v2812_v52  ;;  %v1079_v26 = vand.u32 4294901760, %v1078_v12  ;;  %v290_v59 = vld [vmem:[#allocation5 + $0x1f0] sm:$0xff]  ;;  %v1091_v62 = vand.u32 4294901760, %v1090_v0 }
  0xf4   :  { %825 = vmatmul.f32.vlgmr.msra.gmra.mxu0 %v2597_v6  ;;  %1127 = vmatpush.msrb.mxu2 %v2680_v28  ;;  %v1072_v6 = vsub.f32 %v2764_v41, %v3205_v18  ;;  %v3208_v8 = vand.u32 4294901760, %v2867_v13  ;;  %v284_v18 = vld [vmem:[#allocation5 + $0x1c0] sm:$0xff] }
  0xf5   :  { %975 = vmatpush.msrb.mxu0 %v2634_v22  ;;  %1175 = vmatpush.msrb.mxu3 %v2650_v25  ;;  %v2924_v46 = vand.u32 4294901760, %v284_v18 }
  0xf6   :  { %1050 = vmatpush.msrb.mxu1 %v1049_v31  ;;  %1130 = vmatpush.msrb.mxu2 %v2694_v3  ;;  %v1073_v38 = vand.u32 4294901760, %v1072_v6  ;;  %v1096_v31 = vsub.f32 %v2812_v52, %v3201_v16  ;;  %v2858_v6 = vand.u32 4294901760, %v290_v59 }
  0xf7   :  { %977 = vmatpush.msrb.mxu0 %v2640_v34  ;;  %1177 = vmatpush.msrb.mxu3 %v2660_v29 }
  0xf8   :  { %1056 = vmatpush.msrb.mxu1 %v1055_v37  ;;  %1133 = vmatpush.msrb.mxu2 %v2712_v14  ;;  %v3200_v37 = vand.u32 4294901760, %v2834_v5  ;;  %v1097_v12 = vand.u32 4294901760, %v1096_v31  ;;  %v2875_v31 = vsub.f32 %v290_v59, %v2858_v6 }
  0xf9   :  { %979 = vmatpush.msrb.mxu0 %v2650_v25  ;;  %1179 = vmatpush.msrb.mxu3 %v2671_v35 }
  0xfa   :  { %1062 = vmatpush.msrb.mxu1 %v1061_v61  ;;  %1136 = vmatpush.msrb.mxu2 %v2722_v58  ;;  %v1102_v61 = vsub.f32 %v2824_v49, %v3199_v57  ;;  %v287_v57 = vld [vmem:[#allocation5 + $0x1d8] sm:$0xff] }
  0xfb   :  { %981 = vmatpush.msrb.mxu0 %v2660_v29  ;;  %1181 = vmatpush.msrb.mxu3 %v2684_v39 }
  0xfc   :  { %1068 = vmatpush.msrb.mxu1 %v1067_v15  ;;  %1139 = vmatpush.msrb.mxu2 %v2735_v42  ;;  %v289_v15 = vld [vmem:[#allocation5 + $0x1e8] sm:$0xff] }
  0xfd   :  { %983 = vmatpush.msrb.mxu0 %v2671_v35  ;;  %1183 = vmatpush.msrb.mxu3 %v2696_v1  ;;  %v2871_v0 = vand.u32 4294901760, %v289_v15 }
  0xfe   :  { %1074 = vmatpush.msrb.mxu1 %v1073_v38  ;;  %1142 = vmatpush.msrb.mxu2 %v2752_v53  ;;  %v1108_v38 = vsub.f32 %v2834_v5, %v3200_v37  ;;  %v286_v37 = vld [vmem:[#allocation5 + $0x1d0] sm:$0xff] }
  0xff   :  { %985 = vmatpush.msrb.mxu0 %v2684_v39  ;;  %1185 = vmatpush.msrb.mxu3 %v2707_v2  ;;  %v2888_v59 = vsub.f32 %v289_v15, %v2871_v0  ;;  %v1359_v15 = vsub.f32 %v2867_v13, %v3208_v8  ;;  %v283_v8 = vld [vmem:[#allocation5 + $0x1b8] sm:$0xff] }
 0x100   :  { %1080 = vmatpush.msrb.mxu1 %v1079_v26  ;;  %1145 = vmatpush.msrb.mxu2 %v2764_v41  ;;  %v288_v26 = vld [vmem:[#allocation5 + $0x1e0] sm:$0xff]  ;;  %v1109_v16 = vand.u32 4294901760, %v1108_v38  ;;  %v2894_v38 = vand.u32 4294901760, %v286_v37 }
 0x101   :  { %987 = vmatpush.msrb.mxu0 %v2696_v1  ;;  %1187 = vmatpush.msrb.mxu3 %v2726_v27  ;;  %v2879_v30 = vand.u32 4294901760, %v288_v26  ;;  %v3217_v4 = vand.u32 4294901760, %v2888_v59  ;;  %v1360_v63 = vand.u32 4294901760, %v1359_v15 }
 0x102   :  { %1086 = vmatpush.msrb.mxu1 %v1085_v47  ;;  %1148 = vmatpush.msrb.mxu2 %v2776_v21  ;;  %v1103_v47 = vand.u32 4294901760, %v1102_v61  ;;  %v1007_v61 = vsub.f32 %v2601_v56, %v2601_v56 }
 0x103   :  { %989 = vmatpush.msrb.mxu0 %v2707_v2  ;;  %1189 = vmatpush.msrb.mxu3 %v2741_v55  ;;  %v2899_v23 = vsub.f32 %v288_v26, %v2879_v30 }
 0x104   :  { %1092 = vmatpush.msrb.mxu1 %v1091_v62  ;;  %1151 = vmatpush.msrb.mxu2 %v2788_v44  ;;  %v2883_v62 = vand.u32 4294901760, %v287_v57 }
 0x105   :  { %991 = vmatpush.msrb.mxu0 %v2726_v27  ;;  %1191 = vmatpush.msrb.mxu3 %v2754_v43  ;;  %3286 = vst [vmem:[#allocation11_spill] sm:$0xff] %v2899_v23  ;;  %v3218_v10 = vand.u32 4294901760, %v2899_v23 }
 0x106   :  { %1098 = vmatpush.msrb.mxu1 %v1097_v12  ;;  %1154 = vmatpush.msrb.mxu2 %v2800_v50  ;;  %v3214_v12 = vand.u32 4294901760, %v2875_v31 }
 0x107   :  { %993 = vmatpush.msrb.mxu0 %v2741_v55  ;;  %1193 = vmatpush.msrb.mxu3 %v2766_v20 }
 0x108   :  { %1104 = vmatpush.msrb.mxu1 %v1103_v47  ;;  %1157 = vmatpush.msrb.mxu2 %v2812_v52  ;;  %v2906_v47 = vsub.f32 %v287_v57, %v2883_v62  ;;  %v1365_v26 = vsub.f32 %v2875_v31, %v3214_v12  ;;  %v2919_v57 = vsub.f32 %v286_v37, %v2894_v38  ;;  %v2936_v12 = vand.u32 4294901760, %v283_v8 }
 0x109   :  { %995 = vmatpush.msrb.mxu0 %v2754_v43  ;;  %1195 = vmatpush.msrb.mxu3 %v2778_v45  ;;  %v2934_v37 = vsub.f32 %v285_v60, %v2911_v17  ;;  %v2946_v60 = vsub.f32 %v284_v18, %v2924_v46 }
 0x10a   :  { %1110 = vmatpush.msrb.mxu1 %v1109_v16  ;;  %1160 = vmatpush.msrb.mxu2 %v2824_v49  ;;  %3287 = vst [vmem:[#allocation12_spill] sm:$0xff] %v2906_v47  ;;  %v1008_v16 = vand.u32 4294901760, %v1007_v61  ;;  %v1366_v15 = vand.u32 4294901760, %v1365_v26  ;;  %v2958_v18 = vsub.f32 %v283_v8, %v2936_v12  ;;  %v2970_v8 = vsub.f32 %v282_v32, %v2948_v24 }
 0x10b   :  { %997 = vmatpush.msrb.mxu0 %v2766_v20  ;;  %1197 = vmatpush.msrb.mxu3 %v2790_v48  ;;  %3288 = vst [vmem:[#allocation13_spill] sm:$0xff] %v2919_v57 }
 0x10c   :  { %1112 = vmatmul.f32.vlgmr.msrb.gmra.mxu1 %v2601_v56  ;;  %1163 = vmatpush.msrb.mxu2 %v2834_v5  ;;  %v1009_v19 = vsub.f32 %v1007_v61, %v1008_v16 }
 0x10d   :  { %1279 = vmatpush.msra.mxu1 %v2634_v22  ;;  %999 = vmatpush.msrb.mxu0 %v2778_v45  ;;  %v1371_v22 = vsub.f32 %v2888_v59, %v3217_v4  ;;  %v1377_v4 = vsub.f32 %v2899_v23, %v3218_v10  ;;  %v3290_v23 = vand.u32 4294901760, %v2919_v57 }
 0x10e   :  { %1199 = vmatpush.msrb.mxu3 %v2802_v54  ;;  %1166 = vmatmul.f32.vlgmr.msrb.gmra.mxu2 %v1007_v61  ;;  %v3289_v61 = vand.u32 4294901760, %v2906_v47 }
 0x10f   :  { %1281 = vmatpush.msra.mxu1 %v2640_v34  ;;  %1316 = vmatpush.msra.mxu2 %v2850_v33  ;;  %v281_v34 = vld [vmem:[#allocation5 + $0x1a8] sm:$0xff] }
 0x110   :  { %1001 = vmatpush.msrb.mxu0 %v2790_v48  ;;  %1201 = vmatpush.msrb.mxu3 %v2814_v40  ;;  %v1383_v26 = vsub.f32 %v2906_v47, %v3289_v61  ;;  %v2960_v10 = vand.u32 4294901760, %v281_v34  ;;  %v1389_v61 = vsub.f32 %v2919_v57, %v3290_v23  ;;  %v279_v47 = vld [vmem:[#allocation5 + $0x198] sm:$0xff]  ;;  %v3291_v23 = vand.u32 4294901760, %v2648_v9 }
 0x111   :  { %1205 = vmatmul.f32.vlgmr.msrb.gmra.mxu3 %v1008_v16  ;;  %1283 = vmatpush.msra.mxu1 %v2650_v25  ;;  %v1372_v25 = vand.u32 4294901760, %v1371_v22  ;;  %v2972_v16 = vand.u32 4294901760, %v280_v51  ;;  %v3292_v57 = vand.u32 4294901760, %v2934_v37  ;;  %v2984_v22 = vand.u32 4294901760, %v279_v47 }
 0x112   :  { %1318 = vmatpush.msra.mxu2 %v2858_v6  ;;  %1361 = vmatpush.msra.mxu3 %v1360_v63  ;;  %v1010_v63 = vand.u32 4294901760, %v1009_v19  ;;  %v1384_v19 = vand.u32 4294901760, %v1383_v26  ;;  %v2982_v32 = vsub.f32 %v281_v34, %v2960_v10  ;;  %v1390_v26 = vand.u32 4294901760, %v1389_v61 }
 0x113   :  { %1003 = vmatpush.msrb.mxu0 %v2802_v54  ;;  %1285 = vmatpush.msra.mxu1 %v2660_v29  ;;  %v1378_v29 = vand.u32 4294901760, %v1377_v4  ;;  %v3293_v9 = vand.u32 4294901760, %v2658_v36  ;;  %v2995_v34 = vsub.f32 %v280_v51, %v2972_v16  ;;  %v277_v4 = vld [vmem:[#allocation5 + $0x188] sm:$0xff]  ;;  %v3295_v36 = vand.u32 4294901760, %v2669_v11 }
 0x114   :  { %1320 = vmatpush.msra.mxu2 %v2871_v0  ;;  %1367 = vmatpush.msra.mxu3 %v1366_v15  ;;  %v278_v15 = vld [vmem:[#allocation5 + $0x190] sm:$0xff]  ;;  %v3296_v61 = vand.u32 4294901760, %v2958_v18  ;;  %v3008_v51 = vsub.f32 %v279_v47, %v2984_v22  ;;  %v3297_v11 = vand.u32 4294901760, %v2680_v28  ;;  %v3298_v28 = vand.u32 4294901760, %v2694_v3 }
 0x115   :  { %1005 = vmatpush.msrb.mxu0 %v2814_v40  ;;  %1287 = vmatpush.msra.mxu1 %v2671_v35  ;;  %v1395_v35 = vsub.f32 %v2934_v37, %v3292_v57 }
 0x116   :  { %1011 = vmatmul.f32.vlgmr.msrb.gmra.mxu0 %v1010_v63  ;;  %1322 = vmatpush.msra.mxu2 %v2879_v30  ;;  %v1412_v63 = vand.u32 4294901760, %v2970_v8 }
 0x117   :  { %1212 = vmatpush.msra.mxu0 %v3291_v23  ;;  %1373 = vmatpush.msra.mxu3 %v1372_v25  ;;  %v3294_v25 = vand.u32 4294901760, %v2946_v60  ;;  %v2997_v23 = vand.u32 4294901760, %v278_v15 }
 0x118   :  { %1289 = vmatpush.msra.mxu1 %v2684_v39  ;;  %1324 = vmatpush.msra.mxu2 %v2883_v62  ;;  %v1396_v39 = vand.u32 4294901760, %v1395_v35  ;;  %v1413_v35 = vsub.f32 %v2970_v8, %v1412_v63 }
 0x119   :  { %1216 = vmatpush.msra.mxu0 %v3293_v9  ;;  %1379 = vmatpush.msra.mxu3 %v1378_v29  ;;  %v1401_v57 = vsub.f32 %v2946_v60, %v3294_v25  ;;  %v1407_v29 = vsub.f32 %v2958_v18, %v3296_v61  ;;  %v1418_v9 = vand.u32 4294901760, %v2982_v32  ;;  %v276_v25 = vld [vmem:[#allocation5 + $0x180] sm:$0xff]  ;;  %v3021_v47 = vsub.f32 %v278_v15, %v2997_v23 }
 0x11a   :  { %1291 = vmatpush.msra.mxu1 %v2696_v1  ;;  %1326 = vmatpush.msra.mxu2 %v2894_v38  ;;  %v3012_v1 = vand.u32 4294901760, %v277_v4  ;;  %v1430_v61 = vand.u32 4294901760, %v3008_v51  ;;  %v3299_v15 = vand.u32 4294901760, %v2712_v14  ;;  %v1414_v3 = vand.u32 4294901760, %v1413_v35 }
 0x11b   :  { %1220 = vmatpush.msra.mxu0 %v3295_v36  ;;  %1385 = vmatpush.msra.mxu3 %v1384_v19  ;;  %v1402_v19 = vand.u32 4294901760, %v1401_v57  ;;  %v1424_v36 = vand.u32 4294901760, %v2995_v34  ;;  %v1419_v57 = vsub.f32 %v2982_v32, %v1418_v9  ;;  %v3300_v14 = vand.u32 4294901760, %v2722_v58 }
 0x11c   :  { %1293 = vmatpush.msra.mxu1 %v2707_v2  ;;  %1328 = vmatpush.msra.mxu2 %v2911_v17  ;;  %v3025_v2 = vand.u32 4294901760, %v276_v25  ;;  %v3301_v35 = vand.u32 4294901760, %v2735_v42 }
 0x11d   :  { %1224 = vmatpush.msra.mxu0 %v3297_v11  ;;  %1391 = vmatpush.msra.mxu3 %v1390_v26  ;;  %v1408_v26 = vand.u32 4294901760, %v1407_v29  ;;  %v1436_v29 = vand.u32 4294901760, %v3021_v47  ;;  %v3046_v11 = vsub.f32 %v2593_v7, %v2593_v7 }
 0x11e   :  { %1295 = vmatpush.msra.mxu1 %v2726_v27  ;;  %1330 = vmatpush.msra.mxu2 %v2924_v46  ;;  %v3036_v27 = vsub.f32 %v277_v4, %v3012_v1  ;;  %v1420_v4 = vand.u32 4294901760, %v1419_v57 }
 0x11f   :  { %1228 = vmatpush.msra.mxu0 %v3298_v28  ;;  %1397 = vmatpush.msra.mxu3 %v1396_v39  ;;  %v1425_v39 = vsub.f32 %v2995_v34, %v1424_v36  ;;  %v1437_v58 = vsub.f32 %v3021_v47, %v1436_v29  ;;  %v1349_v28 = vand.u32 4294901760, %v3046_v11 }
 0x120   :  { %1297 = vmatpush.msra.mxu1 %v2741_v55  ;;  %1332 = vmatpush.msra.mxu2 %v2936_v12  ;;  %v3051_v55 = vsub.f32 %v276_v25, %v3025_v2 }
 0x121   :  { %1232 = vmatpush.msra.mxu0 %v3299_v15  ;;  %1403 = vmatpush.msra.mxu3 %v1402_v19  ;;  %v1431_v19 = vsub.f32 %v3008_v51, %v1430_v61  ;;  %v1426_v25 = vand.u32 4294901760, %v1425_v39  ;;  %v1438_v15 = vand.u32 4294901760, %v1437_v58 }
 0x122   :  { %1299 = vmatpush.msra.mxu1 %v2754_v43  ;;  %1334 = vmatpush.msra.mxu2 %v2948_v24  ;;  %v1442_v43 = vand.u32 4294901760, %v3036_v27 }
 0x123   :  { %1236 = vmatpush.msra.mxu0 %v3300_v14  ;;  %1409 = vmatpush.msra.mxu3 %v1408_v26  ;;  %v3302_v26 = vand.u32 4294901760, %v2752_v53  ;;  %v1432_v42 = vand.u32 4294901760, %v1431_v19  ;;  %v1350_v53 = vsub.f32 %v3046_v11, %v1349_v28  ;;  %v3311_v19 = vand.u32 4294901760, %v2888_v59 }
 0x124   :  { %1301 = vmatpush.msra.mxu1 %v2766_v20  ;;  %1336 = vmatpush.msra.mxu2 %v2960_v10  ;;  %v1448_v20 = vand.u32 4294901760, %v3051_v55  ;;  %v1443_v57 = vsub.f32 %v3036_v27, %v1442_v43 }
 0x125   :  { %1240 = vmatpush.msra.mxu0 %v3301_v35  ;;  %1415 = vmatpush.msra.mxu3 %v1414_v3  ;;  %v3304_v3 = vand.u32 4294901760, %v2776_v21  ;;  %v1351_v39 = vand.u32 4294901760, %v1350_v53  ;;  %v3306_v21 = vand.u32 4294901760, %v2800_v50  ;;  %v3310_v50 = vand.u32 4294901760, %v2824_v49  ;;  %v3313_v35 = vld [vmem:[#allocation11_spill] sm:$0xff]  ;;  %v3315_v49 = vld [vmem:[#allocation12_spill] sm:$0xff] }
 0x126   :  { %1303 = vmatpush.msra.mxu1 %v2778_v45  ;;  %1338 = vmatpush.msra.mxu2 %v2972_v16  ;;  %v3303_v45 = vand.u32 4294901760, %v2764_v41  ;;  %v1444_v41 = vand.u32 4294901760, %v1443_v57 }
 0x127   :  { %1244 = vmatpush.msra.mxu0 %v3302_v26  ;;  %1421 = vmatpush.msra.mxu3 %v1420_v4  ;;  %v3309_v4 = vand.u32 4294901760, %v2875_v31 }
 0x128   :  { %1305 = vmatpush.msra.mxu1 %v2790_v48  ;;  %1340 = vmatpush.msra.mxu2 %v2984_v22  ;;  %v1449_v48 = vsub.f32 %v3051_v55, %v1448_v20 }
 0x129   :  { %1248 = vmatpush.msra.mxu0 %v3303_v45  ;;  %1427 = vmatpush.msra.mxu3 %v1426_v25  ;;  %v3314_v25 = vand.u32 4294901760, %v3313_v35 }
 0x12a   :  { %1307 = vmatpush.msra.mxu1 %v2802_v54  ;;  %1342 = vmatpush.msra.mxu2 %v2997_v23  ;;  %v3305_v54 = vand.u32 4294901760, %v2788_v44  ;;  %v1450_v14 = vand.u32 4294901760, %v1449_v48  ;;  %v3308_v44 = vand.u32 4294901760, %v2812_v52  ;;  %v3312_v52 = vand.u32 4294901760, %v2834_v5  ;;  %v3317_v5 = vld [vmem:[#allocation13_spill] sm:$0xff] }
 0x12b   :  { %1252 = vmatpush.msra.mxu0 %v3304_v3  ;;  %1433 = vmatpush.msra.mxu3 %v1432_v42 }
 0x12c   :  { %1309 = vmatpush.msra.mxu1 %v2814_v40  ;;  %1344 = vmatpush.msra.mxu2 %v3012_v1  ;;  %v3307_v40 = vand.u32 4294901760, %v2867_v13 }
 0x12d   :  { %1256 = vmatpush.msra.mxu0 %v3305_v54  ;;  %1439 = vmatpush.msra.mxu3 %v1438_v15 }
 0x12e   :  { %1311 = vmatmul.f32.vlgmr.msra.gmra.mxu1 %v2601_v56  ;;  %1346 = vmatpush.msra.mxu2 %v3025_v2 }
 0x12f   :  { %1512 = vmatpush.msrb.mxu1 %v2850_v33  ;;  %1260 = vmatpush.msra.mxu0 %v3306_v21 }
 0x130   :  { %1445 = vmatpush.msra.mxu3 %v1444_v41  ;;  %1352 = vmatmul.f32.vlgmr.msra.gmra.mxu2 %v1351_v39 }
 0x131   :  { %1514 = vmatpush.msrb.mxu1 %v2858_v6  ;;  %1553 = vmatpush.msrb.mxu2 %v3307_v40 }
 0x132   :  { %1264 = vmatpush.msra.mxu0 %v3308_v44  ;;  %1451 = vmatpush.msra.mxu3 %v1450_v14 }
 0x133   :  { %1453 = vmatmul.f32.vlgmr.msra.gmra.mxu3 %v2593_v7  ;;  %1516 = vmatpush.msrb.mxu1 %v2871_v0 }
 0x134   :  { %1557 = vmatpush.msrb.mxu2 %v3309_v4  ;;  %1620 = vmatpush.msrb.mxu3 %v2850_v33  ;;  %v3316_v33 = vand.u32 4294901760, %v3315_v49 }
 0x135   :  { %1268 = vmatpush.msra.mxu0 %v3310_v50  ;;  %1518 = vmatpush.msrb.mxu1 %v2879_v30 }
 0x136   :  { %1561 = vmatpush.msrb.mxu2 %v3311_v19  ;;  %1622 = vmatpush.msrb.mxu3 %v2858_v6  ;;  %v3319_v6 = vand.u32 4294901760, %v2934_v37 }
 0x137   :  { %1272 = vmatpush.msra.mxu0 %v3312_v52  ;;  %1520 = vmatpush.msrb.mxu1 %v2883_v62 }
 0x138   :  { %1274 = vmatmul.f32.vlgmr.msra.gmra.mxu0 %v2601_v56  ;;  %1565 = vmatpush.msrb.mxu2 %v3314_v25  ;;  %v3318_v56 = vand.u32 4294901760, %v3317_v5 }
 0x139   :  { %1459 = vmatpush.msrb.mxu0 %v2867_v13  ;;  %1624 = vmatpush.msrb.mxu3 %v2871_v0  ;;  %v3320_v13 = vand.u32 4294901760, %v2946_v60  ;;  %v3321_v0 = vand.u32 4294901760, %v2958_v18 }
 0x13a   :  { %1522 = vmatpush.msrb.mxu1 %v2894_v38  ;;  %1569 = vmatpush.msrb.mxu2 %v3316_v33 }
 0x13b   :  { %1462 = vmatpush.msrb.mxu0 %v2875_v31  ;;  %1626 = vmatpush.msrb.mxu3 %v2879_v30 }
 0x13c   :  { %1524 = vmatpush.msrb.mxu1 %v2911_v17  ;;  %1573 = vmatpush.msrb.mxu2 %v3318_v56 }
 0x13d   :  { %1465 = vmatpush.msrb.mxu0 %v2888_v59  ;;  %1628 = vmatpush.msrb.mxu3 %v2883_v62 }
 0x13e   :  { %1526 = vmatpush.msrb.mxu1 %v2924_v46  ;;  %1577 = vmatpush.msrb.mxu2 %v3319_v6 }
 0x13f   :  { %1468 = vmatpush.msrb.mxu0 %v3313_v35  ;;  %1630 = vmatpush.msrb.mxu3 %v2894_v38 }
 0x140   :  { %1528 = vmatpush.msrb.mxu1 %v2936_v12  ;;  %1581 = vmatpush.msrb.mxu2 %v3320_v13 }
 0x141   :  { %1471 = vmatpush.msrb.mxu0 %v3315_v49  ;;  %1632 = vmatpush.msrb.mxu3 %v2911_v17 }
 0x142   :  { %1530 = vmatpush.msrb.mxu1 %v2948_v24  ;;  %1585 = vmatpush.msrb.mxu2 %v3321_v0 }
 0x143   :  { %1474 = vmatpush.msrb.mxu0 %v3317_v5  ;;  %1634 = vmatpush.msrb.mxu3 %v2924_v46 }
 0x144   :  { %1532 = vmatpush.msrb.mxu1 %v2960_v10  ;;  %1589 = vmatpush.msrb.mxu2 %v1412_v63  ;;  %v431_v46 = vpop.f32.mrf.mxu1 }
 0x145   :  { %1477 = vmatpush.msrb.mxu0 %v2934_v37  ;;  %1636 = vmatpush.msrb.mxu3 %v2936_v12 }
 0x146   :  { %1534 = vmatpush.msrb.mxu1 %v2972_v16  ;;  %1593 = vmatpush.msrb.mxu2 %v1418_v9 }
 0x147   :  { %1480 = vmatpush.msrb.mxu0 %v2946_v60  ;;  %1638 = vmatpush.msrb.mxu3 %v2948_v24 }
 0x148   :  { %1536 = vmatpush.msrb.mxu1 %v2984_v22  ;;  %1597 = vmatpush.msrb.mxu2 %v1424_v36 }
 0x149   :  { %1483 = vmatpush.msrb.mxu0 %v2958_v18  ;;  %1640 = vmatpush.msrb.mxu3 %v2960_v10 }
 0x14a   :  { %1538 = vmatpush.msrb.mxu1 %v2997_v23  ;;  %1601 = vmatpush.msrb.mxu2 %v1430_v61 }
 0x14b   :  { %1486 = vmatpush.msrb.mxu0 %v2970_v8  ;;  %1642 = vmatpush.msrb.mxu3 %v2972_v16 }
 0x14c   :  { %1540 = vmatpush.msrb.mxu1 %v3012_v1  ;;  %1605 = vmatpush.msrb.mxu2 %v1436_v29  ;;  %v330_v24 = vpop.f32.mrf.mxu0  ;;  %v485_v17 = vpop.f32.mrf.mxu2 }
 0x14d   :  { %1489 = vmatpush.msrb.mxu0 %v2982_v32  ;;  %1644 = vmatpush.msrb.mxu3 %v2984_v22  ;;  %v432_v10 = vadd.f32 %v431_v46, %v330_v24  ;;  %v630_v38 = vpop.f32.mrf.mxu1 }
 0x14e   :  { %1542 = vmatpush.msrb.mxu1 %v3025_v2  ;;  %1609 = vmatpush.msrb.mxu2 %v1442_v43  ;;  %v524_v30 = vpop.f32.mrf.mxu3 }
 0x14f   :  { %1492 = vmatpush.msrb.mxu0 %v2995_v34  ;;  %1646 = vmatpush.msrb.mxu3 %v2997_v23  ;;  %v486_v31 = vadd.f32 %v485_v17, %v432_v10 }
 0x150   :  { %1546 = vmatmul.f32.vlgmr.msrb.gmra.mxu1 %v1349_v28  ;;  %1613 = vmatpush.msrb.mxu2 %v1448_v20 }
 0x151   :  { %1495 = vmatpush.msrb.mxu0 %v3008_v51  ;;  %1648 = vmatpush.msrb.mxu3 %v3012_v1  ;;  %v525_v59 = vadd.f32 %v524_v30, %v486_v31 }
 0x152   :  { %1615 = vmatmul.f32.vlgmr.msrb.gmra.mxu2 %v2593_v7 }
 0x153   :  { %1498 = vmatpush.msrb.mxu0 %v3021_v47  ;;  %1650 = vmatpush.msrb.mxu3 %v3025_v2 }
 0x154   :  { %1652 = vmatmul.f32.vlgmr.msrb.gmra.mxu3 %v2593_v7 }
 0x155   :  { %1501 = vmatpush.msrb.mxu0 %v3036_v27  ;;  %v671_v60 = vpop.f32.mrf.mxu2 }
 0x156   :  { %v593_v62 = vpop.f32.mrf.mxu0 }
 0x157   :  { %1504 = vmatpush.msrb.mxu0 %v3051_v55  ;;  %v594_v12 = vadd.f32 %v593_v62, %v525_v59 }
 0x158   :  { %1507 = vmatmul.f32.vlgmr.msrb.gmra.mxu0 %v3046_v11  ;;  %v772_v7 = vpop.f32.mrf.mxu3 }
 0x159   :  { %v631_v37 = vadd.f32 %v630_v38, %v594_v12 }
 0x15b   :  { %v672_v16 = vadd.f32 %v671_v60, %v631_v37 }
 0x15d   :  { %v773_v22 = vadd.f32 %v772_v7, %v672_v16 }
 0x167   :  { %v865_v32 = vpop.f32.mrf.mxu1 }
 0x16f   :  { %v934_v34 = vpop.f32.mrf.mxu2 }
 0x171   :  { %v826_v18 = vpop.f32.mrf.mxu0 }
 0x172   :  { %v827_v8 = vadd.f32 %v826_v18, %v773_v22  ;;  %v971_v9 = vpop.f32.mrf.mxu3 }
 0x174   :  { %v866_v63 = vadd.f32 %v865_v32, %v827_v8 }
 0x176   :  { %v935_v23 = vadd.f32 %v934_v34, %v866_v63 }
 0x178   :  { %v972_v1 = vadd.f32 %v971_v9, %v935_v23 }
 0x189   :  { %v1113_v47 = vpop.f32.mrf.mxu1 }
 0x191   :  { %v1167_v61 = vpop.f32.mrf.mxu2 }
 0x193   :  { %v1012_v51 = vpop.f32.mrf.mxu0 }
 0x194   :  { %v1013_v36 = vadd.f32 %v1012_v51, %v972_v1  ;;  %v1206_v29 = vpop.f32.mrf.mxu3 }
 0x196   :  { %v1114_v2 = vadd.f32 %v1113_v47, %v1013_v36 }
 0x198   :  { %v1168_v27 = vadd.f32 %v1167_v61, %v1114_v2 }
 0x19a   :  { %v1207_v55 = vadd.f32 %v1206_v29, %v1168_v27 }
 0x1ab   :  { %v1312_v58 = vpop.f32.mrf.mxu1 }
 0x1b3   :  { %v1353_v20 = vpop.f32.mrf.mxu2 }
 0x1b5   :  { %v1275_v11 = vpop.f32.mrf.mxu0 }
 0x1b6   :  { %v1276_v43 = vadd.f32 %v1275_v11, %v1207_v55  ;;  %v1454_v42 = vpop.f32.mrf.mxu3 }
 0x1b8   :  { %v1313_v28 = vadd.f32 %v1312_v58, %v1276_v43 }
 0x1ba   :  { %v1354_v26 = vadd.f32 %v1353_v20, %v1313_v28 }
 0x1bc   :  { %v1455_v57 = vadd.f32 %v1454_v42, %v1354_v26 }
 0x1cd   :  { %v1547_v53 = vpop.f32.mrf.mxu1 }
 0x1d5   :  { %v1508_v45 = vpop.f32.mrf.mxu0  ;;  %v1616_v3 = vpop.f32.mrf.mxu2 }
 0x1d6   :  { %v1509_v15 = vadd.f32 %v1508_v45, %v1455_v57 }
 0x1d7   :  { %v1653_v54 = vpop.f32.mrf.mxu3 }
 0x1d8   :  { %v1548_v48 = vadd.f32 %v1547_v53, %v1509_v15 }
 0x1da   :  { %v1617_v41 = vadd.f32 %v1616_v3, %v1548_v48 }
 0x1dc   :  { %v1654_v39 = vadd.f32 %v1653_v54, %v1617_v41 }
 0x1de   :  { %1656 = vst [vmem:[#allocation7] sm:$0xff] %v1654_v39 }
 0x1df   :  { %1667 = dma.vmem_to_hbm [thread:$0]  %s1663_s1, 128, %s1665_s23, [#allocation4]  }
 0x1e0   :  { %1794 = dma.done.wait [#allocation4], 128  }
 0x1e1   :  { %1795 = vsyncadd [#allocation4], 4294967168 }
 0x1e2   :  { %1672 = vsyncpa [#allocation3], 1 }
 0x1e3   :  { %1673 = vsyncpa [#allocation6], 1 }
 0x1e4   :  { %1674 = vsyncpa [#allocation4], 1 }

</bundles_post_ra>
